<compile_context>
chip_gen: v5e
topology: v5e:2x2
jax: 0.10.0
libtpu: 0.0.40
codegen_flags: <defaults>
</compile_context>

<pallas_src>
import functools
import math

import jax
import jax.numpy as jnp
from jax.experimental import pallas as pl
from jax.experimental.pallas import tpu as pltpu


MXU_DTYPE = jnp.bfloat16   # matmul operand dtype (f32 accumulation via preferred_element_type)
LN_EPS = 1e-12             # HF BERT LayerNorm eps


# ----------------------------------------------------------------------------
# small helpers (traced inside kernels)
# ----------------------------------------------------------------------------

def _gelu_tanh(x):
    # TODO(synk): HF BERT uses exact erf-GELU; tanh approximation used here
    # (matches torch.nn.GELU(approximate='tanh'), max abs err ~1e-3).
    c = jnp.float32(math.sqrt(2.0 / math.pi))
    return 0.5 * x * (1.0 + jnp.tanh(c * (x + jnp.float32(0.044715) * x * x * x)))


def _layer_norm(h, g, b, eps):
    mu = jnp.mean(h, axis=-1, keepdims=True)
    var = jnp.mean(jnp.square(h - mu), axis=-1, keepdims=True)
    return (h - mu) * jax.lax.rsqrt(var + jnp.float32(eps)) * g + b


def _pick_row_block(m, target=256):
    """Largest divisor of m that is <= target and a multiple of 8 (else m)."""
    if m <= target:
        return m
    for bm in range(target, 7, -8):
        if m % bm == 0:
            return bm
    return m


# ----------------------------------------------------------------------------
# Kernel 0: plain LayerNorm (embeddings) — no dummy zero residual buffer
# ----------------------------------------------------------------------------

def _layernorm_kernel(x_ref, g_ref, b_ref, o_ref, *, eps):
    o_ref[...] = _layer_norm(x_ref[...], g_ref[...], b_ref[...], eps).astype(o_ref.dtype)


def layernorm(x, gamma, beta, eps=LN_EPS):
    M, H = x.shape
    bm = _pick_row_block(M)
    return pl.pallas_call(
        functools.partial(_layernorm_kernel, eps=eps),
        grid=(M // bm,),
        out_shape=jax.ShapeDtypeStruct((M, H), jnp.float32),
        in_specs=[
            pl.BlockSpec((bm, H), lambda i: (i, 0)),
            pl.BlockSpec((1, H), lambda i: (0, 0)),
            pl.BlockSpec((1, H), lambda i: (0, 0)),
        ],
        out_specs=pl.BlockSpec((bm, H), lambda i: (i, 0)),
        compiler_params=pltpu.CompilerParams(dimension_semantics=("parallel",)),
    )(x, gamma.reshape(1, H), beta.reshape(1, H))


# ----------------------------------------------------------------------------
# Kernel 1: fused attention block
#   QKV proj (all heads, one batched matmul) -> masked softmax -> context
#   -> output proj -> residual add -> LayerNorm.  One grid step per batch,
#   all heads processed together (no per-(batch,head) micro-matmuls).
# ----------------------------------------------------------------------------

def _attention_block_kernel(x_ref, m_ref, wqkv_ref, bqkv_ref, wo_ref, bo_ref,
                            g_ref, b_ref, o_ref, *, nh, scale, eps):
    x = x_ref[0]                                   # (S, H) f32
    mask = m_ref[0]                                # (1, S) f32 — shared by all heads

    # Fused Q/K/V projection: per-head weight blocks stacked on a leading axis,
    # one batch-leading einsum → (3*nh, S, dh).
    xb = jnp.broadcast_to(x.astype(MXU_DTYPE), (3 * nh,) + x.shape)
    qkv = jnp.einsum("hsk,hkd->hsd", xb, wqkv_ref[...].astype(MXU_DTYPE),
                     preferred_element_type=jnp.float32) + bqkv_ref[...]
    q = qkv[0:nh]                                  # (nh, S, dh)
    k = qkv[nh:2 * nh]
    v = qkv[2 * nh:3 * nh]

    # Scaled dot-product attention for all heads at once.
    scores = jnp.einsum("hqd,hkd->hqk", q.astype(MXU_DTYPE), k.astype(MXU_DTYPE),
                        preferred_element_type=jnp.float32) * jnp.float32(scale)
    scores = scores + (1.0 - mask) * jnp.float32(-10000.0)   # additive BERT mask
    mx = jnp.max(scores, axis=-1, keepdims=True)
    p = jnp.exp(scores - mx)
    denom = jnp.sum(p, axis=-1, keepdims=True)
    p = p * pl.reciprocal(denom, approx=True)                # EUP reciprocal, frees VALU
    ctx = jnp.einsum("hqk,hkd->hqd", p.astype(MXU_DTYPE), v.astype(MXU_DTYPE),
                     preferred_element_type=jnp.float32)     # (nh, S, dh)

    # Output projection: sum_h ctx_h @ Wo[h*dh:(h+1)*dh, :]  ==  merge_heads(ctx) @ Wo
    proj = jnp.einsum("hqd,hdm->hqm", ctx.astype(MXU_DTYPE), wo_ref[...].astype(MXU_DTYPE),
                      preferred_element_type=jnp.float32).sum(axis=0) + bo_ref[...]

    # Residual + LayerNorm (f32).
    o_ref[0] = _layer_norm(proj + x, g_ref[...], b_ref[...], eps).astype(o_ref.dtype)


def attention_block(x_bsh, mask_b1s, wqkv_r, bqkv_r, wo_r, bo, gamma, beta,
                    *, nh, scale, eps=LN_EPS):
    B, S, H = x_bsh.shape
    dh = H // nh
    return pl.pallas_call(
        functools.partial(_attention_block_kernel, nh=nh, scale=scale, eps=eps),
        grid=(B,),
        out_shape=jax.ShapeDtypeStruct((B, S, H), jnp.float32),
        in_specs=[
            pl.BlockSpec((1, S, H), lambda b: (b, 0, 0)),        # x (per batch)
            pl.BlockSpec((1, 1, S), lambda b: (b, 0, 0)),        # mask (no head repeat)
            pl.BlockSpec((3 * nh, H, dh), lambda b: (0, 0, 0)),  # fused QKV weight (resident)
            pl.BlockSpec((3 * nh, 1, dh), lambda b: (0, 0, 0)),  # fused QKV bias
            pl.BlockSpec((nh, dh, H), lambda b: (0, 0, 0)),      # output-proj weight
            pl.BlockSpec((1, H), lambda b: (0, 0)),              # output-proj bias
            pl.BlockSpec((1, H), lambda b: (0, 0)),              # LN gamma
            pl.BlockSpec((1, H), lambda b: (0, 0)),              # LN beta
        ],
        out_specs=pl.BlockSpec((1, S, H), lambda b: (b, 0, 0)),
        compiler_params=pltpu.CompilerParams(dimension_semantics=("parallel",)),
    )(x_bsh, mask_b1s, wqkv_r, bqkv_r, wo_r,
      bo.reshape(1, H), gamma.reshape(1, H), beta.reshape(1, H))


# ----------------------------------------------------------------------------
# Kernel 2: fused FFN block: Linear -> GELU -> Linear -> residual -> LayerNorm
# ----------------------------------------------------------------------------

def _ffn_block_kernel(x_ref, w1_ref, b1_ref, w2_ref, b2_ref, g_ref, b_ref, o_ref, *, eps):
    x = x_ref[...]                                                        # (bm, H) f32
    h = jnp.dot(x.astype(MXU_DTYPE), w1_ref[...].astype(MXU_DTYPE),
                preferred_element_type=jnp.float32) + b1_ref[...]
    h = _gelu_tanh(h)                                                     # f32 VPU/EUP math
    y = jnp.dot(h.astype(MXU_DTYPE), w2_ref[...].astype(MXU_DTYPE),
                preferred_element_type=jnp.float32) + b2_ref[...]
    o_ref[...] = _layer_norm(y + x, g_ref[...], b_ref[...], eps).astype(o_ref.dtype)


def ffn_block(x, w1, b1, w2, b2, gamma, beta, eps=LN_EPS):
    M, H = x.shape
    I = w1.shape[1]
    bm = _pick_row_block(M)
    return pl.pallas_call(
        functools.partial(_ffn_block_kernel, eps=eps),
        grid=(M // bm,),
        out_shape=jax.ShapeDtypeStruct((M, H), jnp.float32),
        in_specs=[
            pl.BlockSpec((bm, H), lambda i: (i, 0)),
            pl.BlockSpec((H, I), lambda i: (0, 0)),
            pl.BlockSpec((1, I), lambda i: (0, 0)),
            pl.BlockSpec((I, H), lambda i: (0, 0)),
            pl.BlockSpec((1, H), lambda i: (0, 0)),
            pl.BlockSpec((1, H), lambda i: (0, 0)),
            pl.BlockSpec((1, H), lambda i: (0, 0)),
        ],
        out_specs=pl.BlockSpec((bm, H), lambda i: (i, 0)),
        compiler_params=pltpu.CompilerParams(dimension_semantics=("parallel",)),
    )(x, w1, b1.reshape(1, I), w2, b2.reshape(1, H),
      gamma.reshape(1, H), beta.reshape(1, H))


# ----------------------------------------------------------------------------
# Kernel 3: pooler (tanh Linear on [CLS]) + dropout(identity) + classifier
# ----------------------------------------------------------------------------

def _head_kernel(cls_ref, wp_ref, bp_ref, wc_ref, bc_ref, o_ref):
    pooled = jnp.tanh(
        jnp.dot(cls_ref[...].astype(MXU_DTYPE), wp_ref[...].astype(MXU_DTYPE),
                preferred_element_type=jnp.float32) + bp_ref[...])
    # TODO(synk): Dropout(p=0.3) is identity at inference; training-mode masking not implemented.
    o_ref[...] = (jnp.dot(pooled.astype(MXU_DTYPE), wc_ref[...].astype(MXU_DTYPE),
                          preferred_element_type=jnp.float32) + bc_ref[...]).astype(o_ref.dtype)


def pooler_classifier(cls, wp, bp, wc, bc):
    B, H = cls.shape
    L = wc.shape[1]
    return pl.pallas_call(
        _head_kernel,
        grid=(1,),
        out_shape=jax.ShapeDtypeStruct((B, L), jnp.float32),
        in_specs=[
            pl.BlockSpec((B, H), lambda i: (0, 0)),
            pl.BlockSpec((H, H), lambda i: (0, 0)),
            pl.BlockSpec((1, H), lambda i: (0, 0)),
            pl.BlockSpec((H, L), lambda i: (0, 0)),
            pl.BlockSpec((1, L), lambda i: (0, 0)),
        ],
        out_specs=pl.BlockSpec((B, L), lambda i: (0, 0)),
    )(cls, wp, bp.reshape(1, H), wc, bc.reshape(1, L))


# ----------------------------------------------------------------------------
# Parameter init (deterministic, synthetic — shapes follow BertModel config)
# ----------------------------------------------------------------------------

def init_params(key, cfg):
    def dense(k, fan_in, fan_out):
        kw, _ = jax.random.split(k)
        return {
            "w": jax.random.normal(kw, (fan_in, fan_out), jnp.float32) * 0.02,
            "b": jnp.zeros((fan_out,), jnp.float32),
        }

    H, I = cfg["hidden"], cfg["intermediate"]
    keys = jax.random.split(key, 8 + cfg["num_layers"])
    params = {
        "word_emb": jax.random.normal(keys[0], (cfg["vocab"], H), jnp.float32) * 0.02,
        "pos_emb": jax.random.normal(keys[1], (cfg["max_pos"], H), jnp.float32) * 0.02,
        "type_emb": jax.random.normal(keys[2], (cfg["type_vocab"], H), jnp.float32) * 0.02,
        "emb_ln_g": jnp.ones((H,), jnp.float32),
        "emb_ln_b": jnp.zeros((H,), jnp.float32),
        "pooler": dense(keys[3], H, H),
        "classifier": dense(keys[4], H, cfg["num_labels"]),
        "layers": [],
    }
    for l in range(cfg["num_layers"]):
        lk = jax.random.split(keys[8 + l], 6)
        params["layers"].append({
            "q": dense(lk[0], H, H),
            "k": dense(lk[1], H, H),
            "v": dense(lk[2], H, H),
            "attn_out": dense(lk[3], H, H),
            "ln1_g": jnp.ones((H,), jnp.float32),
            "ln1_b": jnp.zeros((H,), jnp.float32),
            "ffn_in": dense(lk[4], H, I),
            "ffn_out": dense(lk[5], I, H),
            "ln2_g": jnp.ones((H,), jnp.float32),
            "ln2_b": jnp.zeros((H,), jnp.float32),
        })
    return params


# ----------------------------------------------------------------------------
# Forward pass: embeddings -> encoder layers -> pooler -> dropout -> classifier
# ----------------------------------------------------------------------------

def bert_multilabel_forward(params, input_ids, attention_mask,
                            token_type_ids=None, *, cfg):
    B, S = input_ids.shape
    H = cfg["hidden"]
    nh = cfg["num_heads"]
    dh = H // nh
    if token_type_ids is None:
        token_type_ids = jnp.zeros_like(input_ids)

    # --- BertEmbeddings (gathers are glue; LayerNorm in a Pallas kernel) ---
    pos_ids = jnp.arange(S, dtype=jnp.int32)[None, :]
    emb = (jnp.take(params["word_emb"], input_ids, axis=0)
           + jnp.take(params["pos_emb"], pos_ids, axis=0)
           + jnp.take(params["type_emb"], token_type_ids, axis=0))
    x = layernorm(emb.reshape(B * S, H).astype(jnp.float32),
                  params["emb_ln_g"], params["emb_ln_b"])

    # [B, 1, S] mask — reused by every head inside the kernel (no jnp.repeat).
    mask_b1s = attention_mask.astype(jnp.float32).reshape(B, 1, S)
    scale = 1.0 / math.sqrt(dh)

    def heads_w(w):   # (H, H) -> (nh, H, dh): per-head column blocks, head axis leading
        return w.reshape(H, nh, dh).transpose(1, 0, 2)

    # --- BertEncoder layers: 2 fused pallas_calls per layer ---
    for layer in params["layers"]:
        wqkv = jnp.concatenate([heads_w(layer["q"]["w"]),
                                heads_w(layer["k"]["w"]),
                                heads_w(layer["v"]["w"])], axis=0)             # (3nh, H, dh)
        bqkv = jnp.concatenate([layer["q"]["b"].reshape(nh, 1, dh),
                                layer["k"]["b"].reshape(nh, 1, dh),
                                layer["v"]["b"].reshape(nh, 1, dh)], axis=0)   # (3nh, 1, dh)
        wo_r = layer["attn_out"]["w"].reshape(nh, dh, H)                       # (nh, dh, H)

        x3 = attention_block(x.reshape(B, S, H), mask_b1s, wqkv, bqkv, wo_r,
                             layer["attn_out"]["b"], layer["ln1_g"], layer["ln1_b"],
                             nh=nh, scale=scale)
        x = x3.reshape(B * S, H)
        x = ffn_block(x, layer["ffn_in"]["w"], layer["ffn_in"]["b"],
                      layer["ffn_out"]["w"], layer["ffn_out"]["b"],
                      layer["ln2_g"], layer["ln2_b"])

    # --- BertPooler + Dropout(identity) + classifier, fused into one kernel ---
    cls = x.reshape(B, S, H)[:, 0, :]
    logits = pooler_classifier(cls, params["pooler"]["w"], params["pooler"]["b"],
                               params["classifier"]["w"], params["classifier"]["b"])
    return logits


# ----------------------------------------------------------------------------

if __name__ == "__main__":
    cfg = dict(
        vocab=100, hidden=32, num_heads=4, intermediate=128,
        num_layers=4, max_pos=32, type_vocab=2, num_labels=5,
    )
    B, S = 2, 8

    key = jax.random.PRNGKey(0)
    pkey, dkey = jax.random.split(key)
    params = init_params(pkey, cfg)

    input_ids = jax.random.randint(dkey, (B, S), 0, cfg["vocab"], dtype=jnp.int32)
    attention_mask = jnp.ones((B, S), dtype=jnp.int32).at[1, 6:].set(0)  # pad last 2 of row 1
    token_type_ids = jnp.zeros((B, S), dtype=jnp.int32)

    fwd = jax.jit(functools.partial(bert_multilabel_forward, cfg=cfg))
    logits = fwd(params, input_ids, attention_mask, token_type_ids)
    logits = jax.block_until_ready(logits)

    assert logits.shape == (B, cfg["num_labels"])
    assert logits.dtype == jnp.float32
    print("KERNEL_OK")
</pallas_src>

<mosaic_0001>
module attributes {stable_mosaic.version = 11 : i64} {
  func.func @_layernorm_kernel(%arg0: i32, %arg1: memref<16x32xf32, #tpu.memory_space<vmem>>, %arg2: memref<1x32xf32, #tpu.memory_space<vmem>>, %arg3: memref<1x32xf32, #tpu.memory_space<vmem>>, %arg4: memref<16x32xf32, #tpu.memory_space<vmem>>) attributes {dimension_semantics = [#tpu.dimension_semantics<parallel>], iteration_bounds = array<i64: 1>, scalar_prefetch = 0 : i64, scratch_operands = 0 : i64, tpu.core_type = #tpu.core_type<tc>, window_params = [{transform_indices = @transform_0, window_bounds = array<i64: 16, 32>}, {pipeline_mode = #tpu.pipeline_mode<synchronous>, transform_indices = @transform_1, window_bounds = array<i64: 1, 32>}, {pipeline_mode = #tpu.pipeline_mode<synchronous>, transform_indices = @transform_2, window_bounds = array<i64: 1, 32>}, {transform_indices = @transform_3, window_bounds = array<i64: 16, 32>}]} {
    %c0 = arith.constant 0 : index
    %c0_0 = arith.constant 0 : index
    %0 = vector.load %arg1[%c0, %c0_0] : memref<16x32xf32, #tpu.memory_space<vmem>>, vector<16x32xf32>
    %c0_1 = arith.constant 0 : index
    %c0_2 = arith.constant 0 : index
    %1 = vector.load %arg2[%c0_1, %c0_2] : memref<1x32xf32, #tpu.memory_space<vmem>>, vector<1x32xf32>
    %c0_3 = arith.constant 0 : index
    %c0_4 = arith.constant 0 : index
    %2 = vector.load %arg3[%c0_3, %c0_4] : memref<1x32xf32, #tpu.memory_space<vmem>>, vector<1x32xf32>
    %cst = arith.constant dense<0.000000e+00> : vector<16xf32>
    %3 = vector.multi_reduction <add>, %0, %cst [1] : vector<16x32xf32> to vector<16xf32>
    %4 = vector.shape_cast %3 : vector<16xf32> to vector<16x1xf32>
    %cst_5 = arith.constant 3.200000e+01 : f32
    %5 = vector.broadcast %cst_5 : f32 to vector<16x1xf32>
    %6 = arith.divf %4, %5 : vector<16x1xf32>
    %7 = vector.broadcast %6 : vector<16x1xf32> to vector<16x32xf32>
    %8 = arith.subf %0, %7 : vector<16x32xf32>
    %9 = arith.mulf %8, %8 : vector<16x32xf32>
    %cst_6 = arith.constant dense<0.000000e+00> : vector<16xf32>
    %10 = vector.multi_reduction <add>, %9, %cst_6 [1] : vector<16x32xf32> to vector<16xf32>
    %11 = vector.shape_cast %10 : vector<16xf32> to vector<16x1xf32>
    %cst_7 = arith.constant 3.200000e+01 : f32
    %12 = vector.broadcast %cst_7 : f32 to vector<16x1xf32>
    %13 = arith.divf %11, %12 : vector<16x1xf32>
    %14 = vector.broadcast %6 : vector<16x1xf32> to vector<16x32xf32>
    %15 = arith.subf %0, %14 : vector<16x32xf32>
    %cst_8 = arith.constant 9.99999996E-13 : f32
    %16 = vector.broadcast %cst_8 : f32 to vector<16x1xf32>
    %17 = arith.addf %13, %16 : vector<16x1xf32>
    %18 = math.rsqrt %17 : vector<16x1xf32>
    %19 = vector.broadcast %18 : vector<16x1xf32> to vector<16x32xf32>
    %20 = arith.mulf %15, %19 : vector<16x32xf32>
    %21 = vector.broadcast %1 : vector<1x32xf32> to vector<16x32xf32>
    %22 = arith.mulf %20, %21 : vector<16x32xf32>
    %23 = vector.broadcast %2 : vector<1x32xf32> to vector<16x32xf32>
    %24 = arith.addf %22, %23 : vector<16x32xf32>
    %c0_9 = arith.constant 0 : index
    %c0_10 = arith.constant 0 : index
    %25 = vector.load %arg4[%c0_9, %c0_10] : memref<16x32xf32, #tpu.memory_space<vmem>>, vector<16x32xf32>
    tpu.vector_store %arg4[%c0_9, %c0_10], %24 {strides = array<i32>} : memref<16x32xf32, #tpu.memory_space<vmem>>, vector<16x32xf32>,
    return
  }
  func.func @transform_0(%arg0: i32) -> (i32, i32) {
    %c0_i32 = arith.constant 0 : i32
    %c0_i32_0 = arith.constant 0 : i32
    return %arg0, %c0_i32 : i32, i32
  }
  func.func @transform_1(%arg0: i32) -> (i32, i32) {
    %c0_i32 = arith.constant 0 : i32
    %c0_i32_0 = arith.constant 0 : i32
    %c0_i32_1 = arith.constant 0 : i32
    return %c0_i32, %c0_i32_0 : i32, i32
  }
  func.func @transform_2(%arg0: i32) -> (i32, i32) {
    %c0_i32 = arith.constant 0 : i32
    %c0_i32_0 = arith.constant 0 : i32
    %c0_i32_1 = arith.constant 0 : i32
    return %c0_i32, %c0_i32_0 : i32, i32
  }
  func.func @transform_3(%arg0: i32) -> (i32, i32) {
    %c0_i32 = arith.constant 0 : i32
    %c0_i32_0 = arith.constant 0 : i32
    return %arg0, %c0_i32 : i32, i32
  }
}

module attributes {stable_mosaic.version = 11 : i64} {
  func.func @_attention_block_kernel(%arg0: i32, %arg1: memref<1x8x32xf32, #tpu.memory_space<vmem>>, %arg2: memref<1x1x8xf32, #tpu.memory_space<vmem>>, %arg3: memref<12x32x8xf32, #tpu.memory_space<vmem>>, %arg4: memref<12x1x8xf32, #tpu.memory_space<vmem>>, %arg5: memref<4x8x32xf32, #tpu.memory_space<vmem>>, %arg6: memref<1x32xf32, #tpu.memory_space<vmem>>, %arg7: memref<1x32xf32, #tpu.memory_space<vmem>>, %arg8: memref<1x32xf32, #tpu.memory_space<vmem>>, %arg9: memref<1x8x32xf32, #tpu.memory_space<vmem>>) attributes {dimension_semantics = [#tpu.dimension_semantics<parallel>], iteration_bounds = array<i64: 2>, scalar_prefetch = 0 : i64, scratch_operands = 0 : i64, tpu.core_type = #tpu.core_type<tc>, window_params = [{transform_indices = @transform_0, window_bounds = array<i64: 1, 8, 32>}, {transform_indices = @transform_1, window_bounds = array<i64: 1, 1, 8>}, {pipeline_mode = #tpu.pipeline_mode<synchronous>, transform_indices = @transform_2, window_bounds = array<i64: 12, 32, 8>}, {pipeline_mode = #tpu.pipeline_mode<synchronous>, transform_indices = @transform_3, window_bounds = array<i64: 12, 1, 8>}, {pipeline_mode = #tpu.pipeline_mode<synchronous>, transform_indices = @transform_4, window_bounds = array<i64: 4, 8, 32>}, {pipeline_mode = #tpu.pipeline_mode<synchronous>, transform_indices = @transform_5, window_bounds = array<i64: 1, 32>}, {pipeline_mode = #tpu.pipeline_mode<synchronous>, transform_indices = @transform_6, window_bounds = array<i64: 1, 32>}, {pipeline_mode = #tpu.pipeline_mode<synchronous>, transform_indices = @transform_7, window_bounds = array<i64: 1, 32>}, {transform_indices = @transform_8, window_bounds = array<i64: 1, 8, 32>}]} {
    %c0 = arith.constant 0 : index
    %c0_0 = arith.constant 0 : index
    %c0_1 = arith.constant 0 : index
    %0 = vector.load %arg1[%c0, %c0_0, %c0_1] : memref<1x8x32xf32, #tpu.memory_space<vmem>>, vector<1x8x32xf32>
    %1 = vector.shape_cast %0 : vector<1x8x32xf32> to vector<8x32xf32>
    %c0_2 = arith.constant 0 : index
    %c0_3 = arith.constant 0 : index
    %c0_4 = arith.constant 0 : index
    %2 = vector.load %arg2[%c0_2, %c0_3, %c0_4] : memref<1x1x8xf32, #tpu.memory_space<vmem>>, vector<1x1x8xf32>
    %3 = vector.shape_cast %2 : vector<1x1x8xf32> to vector<1x8xf32>
    %4 = arith.truncf %1 : vector<8x32xf32> to vector<8x32xbf16>
    %5 = vector.shape_cast %4 : vector<8x32xbf16> to vector<1x8x32xbf16>
    %6 = vector.broadcast %5 : vector<1x8x32xbf16> to vector<12x8x32xbf16>
    %c0_5 = arith.constant 0 : index
    %c0_6 = arith.constant 0 : index
    %c0_7 = arith.constant 0 : index
    %7 = vector.load %arg3[%c0_5, %c0_6, %c0_7] : memref<12x32x8xf32, #tpu.memory_space<vmem>>, vector<12x32x8xf32>
    %8 = arith.truncf %7 : vector<12x32x8xf32> to vector<12x32x8xbf16>
    "tpu.trace_start"() <{level = 10 : i32, message = "hsk,hkd->hsd"}> : () -> ()
    %cst = arith.constant dense<0.000000e+00> : vector<12x8x8xf32>
    %9 = tpu.matmul %6, %8, %cst {dimension_numbers = #tpu.dot_dimension_numbers<[2], [1], [1], [2], [0, 0, 0, 1, 1, 2], [0], [0]>} : vector<12x8x32xbf16>, vector<12x32x8xbf16>, vector<12x8x8xf32> -> vector<12x8x8xf32>
    "tpu.trace_stop"() : () -> ()
    %c0_8 = arith.constant 0 : index
    %c0_9 = arith.constant 0 : index
    %c0_10 = arith.constant 0 : index
    %10 = vector.load %arg4[%c0_8, %c0_9, %c0_10] : memref<12x1x8xf32, #tpu.memory_space<vmem>>, vector<12x1x8xf32>
    %11 = vector.broadcast %10 : vector<12x1x8xf32> to vector<12x8x8xf32>
    %12 = arith.addf %9, %11 : vector<12x8x8xf32>
    %13 = vector.extract_strided_slice %12 {offsets = [0, 0, 0], sizes = [4, 8, 8], strides = [1, 1, 1]} : vector<12x8x8xf32> to vector<4x8x8xf32>
    %14 = vector.extract_strided_slice %12 {offsets = [4, 0, 0], sizes = [4, 8, 8], strides = [1, 1, 1]} : vector<12x8x8xf32> to vector<4x8x8xf32>
    %15 = vector.extract_strided_slice %12 {offsets = [8, 0, 0], sizes = [4, 8, 8], strides = [1, 1, 1]} : vector<12x8x8xf32> to vector<4x8x8xf32>
    %16 = arith.truncf %13 : vector<4x8x8xf32> to vector<4x8x8xbf16>
    %17 = arith.truncf %14 : vector<4x8x8xf32> to vector<4x8x8xbf16>
    "tpu.trace_start"() <{level = 10 : i32, message = "hqd,hkd->hqk"}> : () -> ()
    %cst_11 = arith.constant dense<0.000000e+00> : vector<4x8x8xf32>
    %18 = tpu.matmul %16, %17, %cst_11 {dimension_numbers = #tpu.dot_dimension_numbers<[2], [2], [1], [1], [0, 0, 0, 1, 1, 1], [0], [0]>} : vector<4x8x8xbf16>, vector<4x8x8xbf16>, vector<4x8x8xf32> -> vector<4x8x8xf32>
    "tpu.trace_stop"() : () -> ()
    %cst_12 = arith.constant 0.353553385 : f32
    %19 = vector.broadcast %cst_12 : f32 to vector<4x8x8xf32>
    %20 = arith.mulf %18, %19 : vector<4x8x8xf32>
    %cst_13 = arith.constant 1.000000e+00 : f32
    %21 = vector.broadcast %cst_13 : f32 to vector<1x8xf32>
    %22 = arith.subf %21, %3 : vector<1x8xf32>
    %cst_14 = arith.constant -1.000000e+04 : f32
    %23 = vector.broadcast %cst_14 : f32 to vector<1x8xf32>
    %24 = arith.mulf %22, %23 : vector<1x8xf32>
    %25 = vector.shape_cast %24 : vector<1x8xf32> to vector<1x1x8xf32>
    %26 = vector.broadcast %25 : vector<1x1x8xf32> to vector<4x8x8xf32>
    %27 = arith.addf %20, %26 : vector<4x8x8xf32>
    %cst_15 = arith.constant dense<0xFF800000> : vector<4x8xf32>
    %28 = vector.multi_reduction <maximumf>, %27, %cst_15 [2] : vector<4x8x8xf32> to vector<4x8xf32>
    %29 = vector.shape_cast %28 : vector<4x8xf32> to vector<4x8x1xf32>
    %30 = vector.broadcast %29 : vector<4x8x1xf32> to vector<4x8x8xf32>
    %31 = arith.subf %27, %30 : vector<4x8x8xf32>
    %32 = math.exp %31 : vector<4x8x8xf32>
    %cst_16 = arith.constant dense<0.000000e+00> : vector<4x8xf32>
    %33 = vector.multi_reduction <add>, %32, %cst_16 [2] : vector<4x8x8xf32> to vector<4x8xf32>
    %34 = vector.shape_cast %33 : vector<4x8xf32> to vector<4x8x1xf32>
    %35 = tpu.reciprocal %34 {approx = true} : vector<4x8x1xf32> -> vector<4x8x1xf32>
    %36 = vector.broadcast %35 : vector<4x8x1xf32> to vector<4x8x8xf32>
    %37 = arith.mulf %32, %36 : vector<4x8x8xf32>
    %38 = arith.truncf %37 : vector<4x8x8xf32> to vector<4x8x8xbf16>
    %39 = arith.truncf %15 : vector<4x8x8xf32> to vector<4x8x8xbf16>
    "tpu.trace_start"() <{level = 10 : i32, message = "hqk,hkd->hqd"}> : () -> ()
    %cst_17 = arith.constant dense<0.000000e+00> : vector<4x8x8xf32>
    %40 = tpu.matmul %38, %39, %cst_17 {dimension_numbers = #tpu.dot_dimension_numbers<[2], [1], [1], [2], [0, 0, 0, 1, 1, 2], [0], [0]>} : vector<4x8x8xbf16>, vector<4x8x8xbf16>, vector<4x8x8xf32> -> vector<4x8x8xf32>
    "tpu.trace_stop"() : () -> ()
    %41 = arith.truncf %40 : vector<4x8x8xf32> to vector<4x8x8xbf16>
    %c0_18 = arith.constant 0 : index
    %c0_19 = arith.constant 0 : index
    %c0_20 = arith.constant 0 : index
    %42 = vector.load %arg5[%c0_18, %c0_19, %c0_20] : memref<4x8x32xf32, #tpu.memory_space<vmem>>, vector<4x8x32xf32>
    %43 = arith.truncf %42 : vector<4x8x32xf32> to vector<4x8x32xbf16>
    "tpu.trace_start"() <{level = 10 : i32, message = "hqd,hdm->hqm"}> : () -> ()
    %cst_21 = arith.constant dense<0.000000e+00> : vector<4x8x32xf32>
    %44 = tpu.matmul %41, %43, %cst_21 {dimension_numbers = #tpu.dot_dimension_numbers<[2], [1], [1], [2], [0, 0, 0, 1, 1, 2], [0], [0]>} : vector<4x8x8xbf16>, vector<4x8x32xbf16>, vector<4x8x32xf32> -> vector<4x8x32xf32>
    "tpu.trace_stop"() : () -> ()
    %cst_22 = arith.constant dense<0.000000e+00> : vector<8x32xf32>
    %45 = vector.multi_reduction <add>, %44, %cst_22 [0] : vector<4x8x32xf32> to vector<8x32xf32>
    %c0_23 = arith.constant 0 : index
    %c0_24 = arith.constant 0 : index
    %46 = vector.load %arg6[%c0_23, %c0_24] : memref<1x32xf32, #tpu.memory_space<vmem>>, vector<1x32xf32>
    %47 = vector.broadcast %46 : vector<1x32xf32> to vector<8x32xf32>
    %48 = arith.addf %45, %47 : vector<8x32xf32>
    %49 = arith.addf %48, %1 : vector<8x32xf32>
    %c0_25 = arith.constant 0 : index
    %c0_26 = arith.constant 0 : index
    %50 = vector.load %arg7[%c0_25, %c0_26] : memref<1x32xf32, #tpu.memory_space<vmem>>, vector<1x32xf32>
    %c0_27 = arith.constant 0 : index
    %c0_28 = arith.constant 0 : index
    %51 = vector.load %arg8[%c0_27, %c0_28] : memref<1x32xf32, #tpu.memory_space<vmem>>, vector<1x32xf32>
    %cst_29 = arith.constant dense<0.000000e+00> : vector<8xf32>
    %52 = vector.multi_reduction <add>, %49, %cst_29 [1] : vector<8x32xf32> to vector<8xf32>
    %53 = vector.shape_cast %52 : vector<8xf32> to vector<8x1xf32>
    %cst_30 = arith.constant 3.200000e+01 : f32
    %54 = vector.broadcast %cst_30 : f32 to vector<8x1xf32>
    %55 = arith.divf %53, %54 : vector<8x1xf32>
    %56 = vector.broadcast %55 : vector<8x1xf32> to vector<8x32xf32>
    %57 = arith.subf %49, %56 : vector<8x32xf32>
    %58 = arith.mulf %57, %57 : vector<8x32xf32>
    %cst_31 = arith.constant dense<0.000000e+00> : vector<8xf32>
    %59 = vector.multi_reduction <add>, %58, %cst_31 [1] : vector<8x32xf32> to vector<8xf32>
    %60 = vector.shape_cast %59 : vector<8xf32> to vector<8x1xf32>
    %cst_32 = arith.constant 3.200000e+01 : f32
    %61 = vector.broadcast %cst_32 : f32 to vector<8x1xf32>
    %62 = arith.divf %60, %61 : vector<8x1xf32>
    %63 = vector.broadcast %55 : vector<8x1xf32> to vector<8x32xf32>
    %64 = arith.subf %49, %63 : vector<8x32xf32>
    %cst_33 = arith.constant 9.99999996E-13 : f32
    %65 = vector.broadcast %cst_33 : f32 to vector<8x1xf32>
    %66 = arith.addf %62, %65 : vector<8x1xf32>
    %67 = math.rsqrt %66 : vector<8x1xf32>
    %68 = vector.broadcast %67 : vector<8x1xf32> to vector<8x32xf32>
    %69 = arith.mulf %64, %68 : vector<8x32xf32>
    %70 = vector.broadcast %50 : vector<1x32xf32> to vector<8x32xf32>
    %71 = arith.mulf %69, %70 : vector<8x32xf32>
    %72 = vector.broadcast %51 : vector<1x32xf32> to vector<8x32xf32>
    %73 = arith.addf %71, %72 : vector<8x32xf32>
    %c0_34 = arith.constant 0 : index
    %c0_35 = arith.constant 0 : index
    %c0_36 = arith.constant 0 : index
    %74 = vector.load %arg9[%c0_34, %c0_35, %c0_36] : memref<1x8x32xf32, #tpu.memory_space<vmem>>, vector<1x8x32xf32>
    %75 = vector.shape_cast %74 : vector<1x8x32xf32> to vector<8x32xf32>
    %76 = vector.shape_cast %73 : vector<8x32xf32> to vector<1x8x32xf32>
    tpu.vector_store %arg9[%c0_34, %c0_35, %c0_36], %76 {strides = array<i32>} : memref<1x8x32xf32, #tpu.memory_space<vmem>>, vector<1x8x32xf32>,
    return
  }
  func.func @transform_0(%arg0: i32) -> (i32, i32, i32) {
    %c0_i32 = arith.constant 0 : i32
    %c0_i32_0 = arith.constant 0 : i32
    %c0_i32_1 = arith.constant 0 : i32
    return %arg0, %c0_i32, %c0_i32_0 : i32, i32, i32
  }
  func.func @transform_1(%arg0: i32) -> (i32, i32, i32) {
    %c0_i32 = arith.constant 0 : i32
    %c0_i32_0 = arith.constant 0 : i32
    %c0_i32_1 = arith.constant 0 : i32
    return %arg0, %c0_i32, %c0_i32_0 : i32, i32, i32
  }
  func.func @transform_2(%arg0: i32) -> (i32, i32, i32) {
    %c0_i32 = arith.constant 0 : i32
    %c0_i32_0 = arith.constant 0 : i32
    %c0_i32_1 = arith.constant 0 : i32
    %c0_i32_2 = arith.constant 0 : i32
    return %c0_i32, %c0_i32_0, %c0_i32_1 : i32, i32, i32
  }
  func.func @transform_3(%arg0: i32) -> (i32, i32, i32) {
    %c0_i32 = arith.constant 0 : i32
    %c0_i32_0 = arith.constant 0 : i32
    %c0_i32_1 = arith.constant 0 : i32
    %c0_i32_2 = arith.constant 0 : i32
    return %c0_i32, %c0_i32_0, %c0_i32_1 : i32, i32, i32
  }
  func.func @transform_4(%arg0: i32) -> (i32, i32, i32) {
    %c0_i32 = arith.constant 0 : i32
    %c0_i32_0 = arith.constant 0 : i32
    %c0_i32_1 = arith.constant 0 : i32
    %c0_i32_2 = arith.constant 0 : i32
    return %c0_i32, %c0_i32_0, %c0_i32_1 : i32, i32, i32
  }
  func.func @transform_5(%arg0: i32) -> (i32, i32) {
    %c0_i32 = arith.constant 0 : i32
    %c0_i32_0 = arith.constant 0 : i32
    %c0_i32_1 = arith.constant 0 : i32
    return %c0_i32, %c0_i32_0 : i32, i32
  }
  func.func @transform_6(%arg0: i32) -> (i32, i32) {
    %c0_i32 = arith.constant 0 : i32
    %c0_i32_0 = arith.constant 0 : i32
    %c0_i32_1 = arith.constant 0 : i32
    return %c0_i32, %c0_i32_0 : i32, i32
  }
  func.func @transform_7(%arg0: i32) -> (i32, i32) {
    %c0_i32 = arith.constant 0 : i32
    %c0_i32_0 = arith.constant 0 : i32
    %c0_i32_1 = arith.constant 0 : i32
    return %c0_i32, %c0_i32_0 : i32, i32
  }
  func.func @transform_8(%arg0: i32) -> (i32, i32, i32) {
    %c0_i32 = arith.constant 0 : i32
    %c0_i32_0 = arith.constant 0 : i32
    %c0_i32_1 = arith.constant 0 : i32
    return %arg0, %c0_i32, %c0_i32_0 : i32, i32, i32
  }
}

module attributes {stable_mosaic.version = 11 : i64} {
  func.func @_ffn_block_kernel(%arg0: i32, %arg1: memref<16x32xf32, #tpu.memory_space<vmem>>, %arg2: memref<32x128xf32, #tpu.memory_space<vmem>>, %arg3: memref<1x128xf32, #tpu.memory_space<vmem>>, %arg4: memref<128x32xf32, #tpu.memory_space<vmem>>, %arg5: memref<1x32xf32, #tpu.memory_space<vmem>>, %arg6: memref<1x32xf32, #tpu.memory_space<vmem>>, %arg7: memref<1x32xf32, #tpu.memory_space<vmem>>, %arg8: memref<16x32xf32, #tpu.memory_space<vmem>>) attributes {dimension_semantics = [#tpu.dimension_semantics<parallel>], iteration_bounds = array<i64: 1>, scalar_prefetch = 0 : i64, scratch_operands = 0 : i64, tpu.core_type = #tpu.core_type<tc>, window_params = [{transform_indices = @transform_0, window_bounds = array<i64: 16, 32>}, {pipeline_mode = #tpu.pipeline_mode<synchronous>, transform_indices = @transform_1, window_bounds = array<i64: 32, 128>}, {pipeline_mode = #tpu.pipeline_mode<synchronous>, transform_indices = @transform_2, window_bounds = array<i64: 1, 128>}, {pipeline_mode = #tpu.pipeline_mode<synchronous>, transform_indices = @transform_3, window_bounds = array<i64: 128, 32>}, {pipeline_mode = #tpu.pipeline_mode<synchronous>, transform_indices = @transform_4, window_bounds = array<i64: 1, 32>}, {pipeline_mode = #tpu.pipeline_mode<synchronous>, transform_indices = @transform_5, window_bounds = array<i64: 1, 32>}, {pipeline_mode = #tpu.pipeline_mode<synchronous>, transform_indices = @transform_6, window_bounds = array<i64: 1, 32>}, {transform_indices = @transform_7, window_bounds = array<i64: 16, 32>}]} {
    %c0 = arith.constant 0 : index
    %c0_0 = arith.constant 0 : index
    %0 = vector.load %arg1[%c0, %c0_0] : memref<16x32xf32, #tpu.memory_space<vmem>>, vector<16x32xf32>
    %1 = arith.truncf %0 : vector<16x32xf32> to vector<16x32xbf16>
    %c0_1 = arith.constant 0 : index
    %c0_2 = arith.constant 0 : index
    %2 = vector.load %arg2[%c0_1, %c0_2] : memref<32x128xf32, #tpu.memory_space<vmem>>, vector<32x128xf32>
    %3 = arith.truncf %2 : vector<32x128xf32> to vector<32x128xbf16>
    %cst = arith.constant dense<0.000000e+00> : vector<16x128xf32>
    %4 = tpu.matmul %1, %3, %cst {dimension_numbers = #tpu.dot_dimension_numbers<[1], [0], [0], [1], [0, 0, 1, 1], [], []>} : vector<16x32xbf16>, vector<32x128xbf16>, vector<16x128xf32> -> vector<16x128xf32>
    %c0_3 = arith.constant 0 : index
    %c0_4 = arith.constant 0 : index
    %5 = vector.load %arg3[%c0_3, %c0_4] : memref<1x128xf32, #tpu.memory_space<vmem>>, vector<1x128xf32>
    %6 = vector.broadcast %5 : vector<1x128xf32> to vector<16x128xf32>
    %7 = arith.addf %4, %6 : vector<16x128xf32>
    %cst_5 = arith.constant 5.000000e-01 : f32
    %8 = vector.broadcast %cst_5 : f32 to vector<16x128xf32>
    %9 = arith.mulf %8, %7 : vector<16x128xf32>
    %cst_6 = arith.constant 4.471500e-02 : f32
    %10 = vector.broadcast %cst_6 : f32 to vector<16x128xf32>
    %11 = arith.mulf %10, %7 : vector<16x128xf32>
    %12 = arith.mulf %11, %7 : vector<16x128xf32>
    %13 = arith.mulf %12, %7 : vector<16x128xf32>
    %14 = arith.addf %7, %13 : vector<16x128xf32>
    %cst_7 = arith.constant 0.797884583 : f32
    %15 = vector.broadcast %cst_7 : f32 to vector<16x128xf32>
    %16 = arith.mulf %15, %14 : vector<16x128xf32>
    %17 = math.tanh %16 : vector<16x128xf32>
    %cst_8 = arith.constant 1.000000e+00 : f32
    %18 = vector.broadcast %cst_8 : f32 to vector<16x128xf32>
    %19 = arith.addf %18, %17 : vector<16x128xf32>
    %20 = arith.mulf %9, %19 : vector<16x128xf32>
    %21 = arith.truncf %20 : vector<16x128xf32> to vector<16x128xbf16>
    %c0_9 = arith.constant 0 : index
    %c0_10 = arith.constant 0 : index
    %22 = vector.load %arg4[%c0_9, %c0_10] : memref<128x32xf32, #tpu.memory_space<vmem>>, vector<128x32xf32>
    %23 = arith.truncf %22 : vector<128x32xf32> to vector<128x32xbf16>
    %cst_11 = arith.constant dense<0.000000e+00> : vector<16x32xf32>
    %24 = tpu.matmul %21, %23, %cst_11 {dimension_numbers = #tpu.dot_dimension_numbers<[1], [0], [0], [1], [0, 0, 1, 1], [], []>} : vector<16x128xbf16>, vector<128x32xbf16>, vector<16x32xf32> -> vector<16x32xf32>
    %c0_12 = arith.constant 0 : index
    %c0_13 = arith.constant 0 : index
    %25 = vector.load %arg5[%c0_12, %c0_13] : memref<1x32xf32, #tpu.memory_space<vmem>>, vector<1x32xf32>
    %26 = vector.broadcast %25 : vector<1x32xf32> to vector<16x32xf32>
    %27 = arith.addf %24, %26 : vector<16x32xf32>
    %28 = arith.addf %27, %0 : vector<16x32xf32>
    %c0_14 = arith.constant 0 : index
    %c0_15 = arith.constant 0 : index
    %29 = vector.load %arg6[%c0_14, %c0_15] : memref<1x32xf32, #tpu.memory_space<vmem>>, vector<1x32xf32>
    %c0_16 = arith.constant 0 : index
    %c0_17 = arith.constant 0 : index
    %30 = vector.load %arg7[%c0_16, %c0_17] : memref<1x32xf32, #tpu.memory_space<vmem>>, vector<1x32xf32>
    %cst_18 = arith.constant dense<0.000000e+00> : vector<16xf32>
    %31 = vector.multi_reduction <add>, %28, %cst_18 [1] : vector<16x32xf32> to vector<16xf32>
    %32 = vector.shape_cast %31 : vector<16xf32> to vector<16x1xf32>
    %cst_19 = arith.constant 3.200000e+01 : f32
    %33 = vector.broadcast %cst_19 : f32 to vector<16x1xf32>
    %34 = arith.divf %32, %33 : vector<16x1xf32>
    %35 = vector.broadcast %34 : vector<16x1xf32> to vector<16x32xf32>
    %36 = arith.subf %28, %35 : vector<16x32xf32>
    %37 = arith.mulf %36, %36 : vector<16x32xf32>
    %cst_20 = arith.constant dense<0.000000e+00> : vector<16xf32>
    %38 = vector.multi_reduction <add>, %37, %cst_20 [1] : vector<16x32xf32> to vector<16xf32>
    %39 = vector.shape_cast %38 : vector<16xf32> to vector<16x1xf32>
    %cst_21 = arith.constant 3.200000e+01 : f32
    %40 = vector.broadcast %cst_21 : f32 to vector<16x1xf32>
    %41 = arith.divf %39, %40 : vector<16x1xf32>
    %42 = vector.broadcast %34 : vector<16x1xf32> to vector<16x32xf32>
    %43 = arith.subf %28, %42 : vector<16x32xf32>
    %cst_22 = arith.constant 9.99999996E-13 : f32
    %44 = vector.broadcast %cst_22 : f32 to vector<16x1xf32>
    %45 = arith.addf %41, %44 : vector<16x1xf32>
    %46 = math.rsqrt %45 : vector<16x1xf32>
    %47 = vector.broadcast %46 : vector<16x1xf32> to vector<16x32xf32>
    %48 = arith.mulf %43, %47 : vector<16x32xf32>
    %49 = vector.broadcast %29 : vector<1x32xf32> to vector<16x32xf32>
    %50 = arith.mulf %48, %49 : vector<16x32xf32>
    %51 = vector.broadcast %30 : vector<1x32xf32> to vector<16x32xf32>
    %52 = arith.addf %50, %51 : vector<16x32xf32>
    %c0_23 = arith.constant 0 : index
    %c0_24 = arith.constant 0 : index
    %53 = vector.load %arg8[%c0_23, %c0_24] : memref<16x32xf32, #tpu.memory_space<vmem>>, vector<16x32xf32>
    tpu.vector_store %arg8[%c0_23, %c0_24], %52 {strides = array<i32>} : memref<16x32xf32, #tpu.memory_space<vmem>>, vector<16x32xf32>,
    return
  }
  func.func @transform_0(%arg0: i32) -> (i32, i32) {
    %c0_i32 = arith.constant 0 : i32
    %c0_i32_0 = arith.constant 0 : i32
    return %arg0, %c0_i32 : i32, i32
  }
  func.func @transform_1(%arg0: i32) -> (i32, i32) {
    %c0_i32 = arith.constant 0 : i32
    %c0_i32_0 = arith.constant 0 : i32
    %c0_i32_1 = arith.constant 0 : i32
    return %c0_i32, %c0_i32_0 : i32, i32
  }
  func.func @transform_2(%arg0: i32) -> (i32, i32) {
    %c0_i32 = arith.constant 0 : i32
    %c0_i32_0 = arith.constant 0 : i32
    %c0_i32_1 = arith.constant 0 : i32
    return %c0_i32, %c0_i32_0 : i32, i32
  }
  func.func @transform_3(%arg0: i32) -> (i32, i32) {
    %c0_i32 = arith.constant 0 : i32
    %c0_i32_0 = arith.constant 0 : i32
    %c0_i32_1 = arith.constant 0 : i32
    return %c0_i32, %c0_i32_0 : i32, i32
  }
  func.func @transform_4(%arg0: i32) -> (i32, i32) {
    %c0_i32 = arith.constant 0 : i32
    %c0_i32_0 = arith.constant 0 : i32
    %c0_i32_1 = arith.constant 0 : i32
    return %c0_i32, %c0_i32_0 : i32, i32
  }
  func.func @transform_5(%arg0: i32) -> (i32, i32) {
    %c0_i32 = arith.constant 0 : i32
    %c0_i32_0 = arith.constant 0 : i32
    %c0_i32_1 = arith.constant 0 : i32
    return %c0_i32, %c0_i32_0 : i32, i32
  }
  func.func @transform_6(%arg0: i32) -> (i32, i32) {
    %c0_i32 = arith.constant 0 : i32
    %c0_i32_0 = arith.constant 0 : i32
    %c0_i32_1 = arith.constant 0 : i32
    return %c0_i32, %c0_i32_0 : i32, i32
  }
  func.func @transform_7(%arg0: i32) -> (i32, i32) {
    %c0_i32 = arith.constant 0 : i32
    %c0_i32_0 = arith.constant 0 : i32
    return %arg0, %c0_i32 : i32, i32
  }
}

module attributes {stable_mosaic.version = 11 : i64} {
  func.func @_head_kernel(%arg0: i32, %arg1: memref<2x32xf32, #tpu.memory_space<vmem>>, %arg2: memref<32x32xf32, #tpu.memory_space<vmem>>, %arg3: memref<1x32xf32, #tpu.memory_space<vmem>>, %arg4: memref<32x5xf32, #tpu.memory_space<vmem>>, %arg5: memref<1x5xf32, #tpu.memory_space<vmem>>, %arg6: memref<2x5xf32, #tpu.memory_space<vmem>>) attributes {dimension_semantics = [#tpu.dimension_semantics<arbitrary>], iteration_bounds = array<i64: 1>, scalar_prefetch = 0 : i64, scratch_operands = 0 : i64, tpu.core_type = #tpu.core_type<tc>, window_params = [{pipeline_mode = #tpu.pipeline_mode<synchronous>, transform_indices = @transform_0, window_bounds = array<i64: 2, 32>}, {pipeline_mode = #tpu.pipeline_mode<synchronous>, transform_indices = @transform_1, window_bounds = array<i64: 32, 32>}, {pipeline_mode = #tpu.pipeline_mode<synchronous>, transform_indices = @transform_2, window_bounds = array<i64: 1, 32>}, {pipeline_mode = #tpu.pipeline_mode<synchronous>, transform_indices = @transform_3, window_bounds = array<i64: 32, 5>}, {pipeline_mode = #tpu.pipeline_mode<synchronous>, transform_indices = @transform_4, window_bounds = array<i64: 1, 5>}, {pipeline_mode = #tpu.pipeline_mode<synchronous>, transform_indices = @transform_5, window_bounds = array<i64: 2, 5>}]} {
    %c0 = arith.constant 0 : index
    %c0_0 = arith.constant 0 : index
    %0 = vector.load %arg1[%c0, %c0_0] : memref<2x32xf32, #tpu.memory_space<vmem>>, vector<2x32xf32>
    %1 = arith.truncf %0 : vector<2x32xf32> to vector<2x32xbf16>
    %c0_1 = arith.constant 0 : index
    %c0_2 = arith.constant 0 : index
    %2 = vector.load %arg2[%c0_1, %c0_2] : memref<32x32xf32, #tpu.memory_space<vmem>>, vector<32x32xf32>
    %3 = arith.truncf %2 : vector<32x32xf32> to vector<32x32xbf16>
    %cst = arith.constant dense<0.000000e+00> : vector<2x32xf32>
    %4 = tpu.matmul %1, %3, %cst {dimension_numbers = #tpu.dot_dimension_numbers<[1], [0], [0], [1], [0, 0, 1, 1], [], []>} : vector<2x32xbf16>, vector<32x32xbf16>, vector<2x32xf32> -> vector<2x32xf32>
    %c0_3 = arith.constant 0 : index
    %c0_4 = arith.constant 0 : index
    %5 = vector.load %arg3[%c0_3, %c0_4] : memref<1x32xf32, #tpu.memory_space<vmem>>, vector<1x32xf32>
    %6 = vector.broadcast %5 : vector<1x32xf32> to vector<2x32xf32>
    %7 = arith.addf %4, %6 : vector<2x32xf32>
    %8 = math.tanh %7 : vector<2x32xf32>
    %9 = arith.truncf %8 : vector<2x32xf32> to vector<2x32xbf16>
    %c0_5 = arith.constant 0 : index
    %c0_6 = arith.constant 0 : index
    %10 = vector.load %arg4[%c0_5, %c0_6] : memref<32x5xf32, #tpu.memory_space<vmem>>, vector<32x5xf32>
    %11 = arith.truncf %10 : vector<32x5xf32> to vector<32x5xbf16>
    %cst_7 = arith.constant dense<0.000000e+00> : vector<2x5xf32>
    %12 = tpu.matmul %9, %11, %cst_7 {dimension_numbers = #tpu.dot_dimension_numbers<[1], [0], [0], [1], [0, 0, 1, 1], [], []>} : vector<2x32xbf16>, vector<32x5xbf16>, vector<2x5xf32> -> vector<2x5xf32>
    %c0_8 = arith.constant 0 : index
    %c0_9 = arith.constant 0 : index
    %13 = vector.load %arg5[%c0_8, %c0_9] : memref<1x5xf32, #tpu.memory_space<vmem>>, vector<1x5xf32>
    %14 = vector.broadcast %13 : vector<1x5xf32> to vector<2x5xf32>
    %15 = arith.addf %12, %14 : vector<2x5xf32>
    %c0_10 = arith.constant 0 : index
    %c0_11 = arith.constant 0 : index
    %16 = vector.load %arg6[%c0_10, %c0_11] : memref<2x5xf32, #tpu.memory_space<vmem>>, vector<2x5xf32>
    tpu.vector_store %arg6[%c0_10, %c0_11], %15 {strides = array<i32>} : memref<2x5xf32, #tpu.memory_space<vmem>>, vector<2x5xf32>,
    return
  }
  func.func @transform_0(%arg0: i32) -> (i32, i32) {
    %c0_i32 = arith.constant 0 : i32
    %c0_i32_0 = arith.constant 0 : i32
    %c0_i32_1 = arith.constant 0 : i32
    return %c0_i32, %c0_i32_0 : i32, i32
  }
  func.func @transform_1(%arg0: i32) -> (i32, i32) {
    %c0_i32 = arith.constant 0 : i32
    %c0_i32_0 = arith.constant 0 : i32
    %c0_i32_1 = arith.constant 0 : i32
    return %c0_i32, %c0_i32_0 : i32, i32
  }
  func.func @transform_2(%arg0: i32) -> (i32, i32) {
    %c0_i32 = arith.constant 0 : i32
    %c0_i32_0 = arith.constant 0 : i32
    %c0_i32_1 = arith.constant 0 : i32
    return %c0_i32, %c0_i32_0 : i32, i32
  }
  func.func @transform_3(%arg0: i32) -> (i32, i32) {
    %c0_i32 = arith.constant 0 : i32
    %c0_i32_0 = arith.constant 0 : i32
    %c0_i32_1 = arith.constant 0 : i32
    return %c0_i32, %c0_i32_0 : i32, i32
  }
  func.func @transform_4(%arg0: i32) -> (i32, i32) {
    %c0_i32 = arith.constant 0 : i32
    %c0_i32_0 = arith.constant 0 : i32
    %c0_i32_1 = arith.constant 0 : i32
    return %c0_i32, %c0_i32_0 : i32, i32
  }
  func.func @transform_5(%arg0: i32) -> (i32, i32) {
    %c0_i32 = arith.constant 0 : i32
    %c0_i32_0 = arith.constant 0 : i32
    %c0_i32_1 = arith.constant 0 : i32
    return %c0_i32, %c0_i32_0 : i32, i32
  }
}

</mosaic_0001>

<bundles_post_ra>
// kernel: bert_multilabel_forward.19
= control target key start
LH: loop header
LB: loop body
LE: loop exit
PB: predicated region body
PF: predicated region fallthrough
CT: control target
= control target key end

     0   :  { %s199_s0 = inlined_call_operand.vmem [shape: f32[2,32], index: 0, kind: input, shape index: {}]   ;;  %s200_s1 = inlined_call_operand.vmem [shape: f32[32,32], index: 1, kind: input, shape index: {}]   ;;  %s201_s2 = inlined_call_operand.vmem [shape: f32[1,32], index: 2, kind: input, shape index: {}]   ;;  %s202_s3 = inlined_call_operand.vmem [shape: f32[32,5], index: 3, kind: input, shape index: {}]   ;;  %s203_s4 = inlined_call_operand.vmem [shape: f32[1,5], index: 4, kind: input, shape index: {}]   ;;  %s204_s5 = inlined_call_operand.hbm [shape: f32[2,5], index: 5, kind: output, shape index: {}]  }
   0x1   :  { %v26_v0 = vld [vmem:[%s200_s1 + $0x10] sm:$0xff]  ;;  %v27_v1 = vld [vmem:[%s200_s1 + $0x18] sm:$0xff]  ;;  %v24_v2 = vld [vmem:[%s200_s1] sm:$0xff] }
   0x2   :  { %v29_v3 = vpack.c.bf16 %v27_v1, %v26_v0  ;;  %v25_v4 = vld [vmem:[%s200_s1 + $0x8] sm:$0xff] }
   0x3   :  { %10 = vsyncpa [#allocation3], 0  ;;  %v28_v5 = vpack.c.bf16 %v25_v4, %v24_v2  ;;  %v22_v6 = vld [vmem:[%s199_s0] sm:$0x3]  ;;  %vm34_vm0 = vcmask 261120   ;;  %v55_v8 = vld [vmem:[%s202_s3 + $0x10] sm:$0xff] }
   0x4   :  { %44 = vmatpush.bf16.msra.mxu0 %v29_v3  ;;  %v23_v7 = vpack.c.bf16 %v22_v6, %v22_v6  ;;  %v56_v9 = vld [vmem:[%s202_s3 + $0x18] sm:$0xff]  ;;  %v53_v11 = vld [vmem:[%s202_s3] sm:$0xff]  ;;  %v54_v12 = vld [vmem:[%s202_s3 + $0x8] sm:$0xff]  ;;  %s130_s13 = smov [#allocation2]   ;;  %s88_s16 = sshll.u32 %s204_s5, 4  ;;  %vm79_vm1 = vcmask 33792   ;;  %s89_s16 = int_to_ptr.hbm [resolvable:$true] %s88_s16 }
   0x5   :  { %v58_v10 = vpack.c.bf16 %v56_v9, %v55_v8  ;;  %v57_v13 = vpack.c.bf16 %v54_v12, %v53_v11  ;;  %v100_v14 = vld [vmem:[%s201_s2] ss:$0 sm:$0xff]  ;;  %s86_s3 = sshll.u32 %s130_s13, 4  ;;  %s87_s3 = int_to_ptr.vmem [resolvable:$true] %s86_s3 }
   0x6   :  { %v101_v20 = vld [vmem:[%s203_s4] ss:$0 sm:$0xff] }
   0x7   :  { %72 = vmatpush.bf16.msra.mxu1 %v58_v10 }
   0x8   :  { %45 = vmatpush.bf16.msra.mxu0 %v28_v5 }
   0xb   :  { %97 = vmatmul.msk.bf16.vlgmr.msra.gmra.mxu0 %vm34_vm0, %v23_v7  ;;  %73 = vmatpush.bf16.msra.mxu1 %v57_v13 }
  0x88   :  { %v47_v15 = vpop.f32.mrf.mxu0 }
  0x89   :  { %v48_v16 = vadd.f32 %v100_v14, %v47_v15 }
  0x8b   :  { %102 = vtanh.f32 %v48_v16 }
  0x90   :  { %v49_v17 = vpop.f32.mrf.mxu0 }
  0x91   :  { %v103_v18 = vpop.eup %102 }
  0x92   :  { %v52_v19 = vpack.c.bf16 %v103_v18, %v103_v18 }
  0x94   :  { %98 = vmatmul.msk.bf16.vlgmr.msra.gmra.mxu1 %vm34_vm0, %v52_v19 }
 0x111   :  { %v75_v21 = vpop.f32.mrf.mxu1 }
 0x112   :  { %v76_v22 = vadd.f32 %v101_v20, %v75_v21 }
 0x114   :  { %80 = vst.msk [vmem:[#allocation2] sm:$0x3] %vm79_vm1, %v76_v22 }
 0x115   :  { %91 = dma.vmem_to_hbm [thread:$0]  %s87_s3, 32, %s89_s16, [#allocation3]  }
 0x119   :  { %v77_v23 = vpop.f32.mrf.mxu1 }
 0x11a   :  { %128 = dma.done.wait [#allocation3], 32  }
 0x11b   :  { %129 = vsyncadd [#allocation3], 4294967264 }
 0x11c   :  { %96 = vsyncpa [#allocation3], 1 }

// kernel: bert_multilabel_forward.10
= control target key start
LH: loop header
LB: loop body
LE: loop exit
PB: predicated region body
PF: predicated region fallthrough
CT: control target
= control target key end

     0   :  { %vm18_vm0 = vcmask 261120   ;;  %v95_v4 = vmov 32.0   ;;  %s140_s0 = inlined_call_operand.vmem [shape: f32[16,32], index: 0, kind: input, shape index: {}]   ;;  %s141_s1 = inlined_call_operand.vmem [shape: f32[1,32], index: 1, kind: input, shape index: {}]   ;;  %s142_s2 = inlined_call_operand.vmem [shape: f32[1,32], index: 2, kind: input, shape index: {}]   ;;  %s143_s3 = inlined_call_operand.vmem [shape: f32[16,32], index: 3, kind: output, shape index: {}]  }
   0x1   :  { %v14_v0 = vld [vmem:[%s140_s0] sm:$0xff]  ;;  %v15_v2 = vld [vmem:[%s140_s0 + $0x8] sm:$0xff]  ;;  %89 = vrcp.f32 %v95_v4 }
   0x2   :  { %v19_v1 = vsel %vm18_vm0, %v14_v0, 0.0  ;;  %v22_v3 = vsel %vm18_vm0, %v15_v2, 0.0  ;;  %v87_v35 = vld [vmem:[%s141_s1] ss:$0 sm:$0xff] }
   0x3   :  { %20 = vadd.xlane.f32.xlu0 %v19_v1  ;;  %v88_v38 = vld [vmem:[%s142_s2] ss:$0 sm:$0xff] }
   0x7   :  { %v90_v5 = vpop.eup %89 }
   0x8   :  { %v26_v6 = vmul.f32 32.0, %v90_v5  ;;  %vm30_vm1 = vweird.f32 %v90_v5 }
   0xa   :  { %v27_v7 = vsub.f32 1.0, %v26_v6 }
   0xb   :  { %23 = vadd.xlane.f32.xlu0 %v22_v3 }
   0xc   :  { %v28_v8 = vmul.f32 %v90_v5, %v27_v7 }
   0xe   :  { %v29_v9 = vadd.f32 %v90_v5, %v28_v8 }
  0x10   :  { %v31_v10 = vsel %vm30_vm1, %v90_v5, %v29_v9 }
  0x76   :  { %v21_v11 = vpop.xlane.xlu0 %20 }
  0x77   :  { %v32_v12 = vmul.f32 %v31_v10, %v21_v11 }
  0x79   :  { %v34_v13 = vsub.f32 %v14_v0, %v32_v12 }
  0x7b   :  { %v36_v14 = vmul.f32 %v34_v13, %v34_v13 }
  0x7d   :  { %v38_v15 = vsel %vm18_vm0, %v36_v14, 0.0 }
  0x7e   :  { %39 = vadd.xlane.f32.xlu1 %v38_v15  ;;  %v24_v16 = vpop.xlane.xlu0 %23 }
  0x7f   :  { %v33_v17 = vmul.f32 %v31_v10, %v24_v16 }
  0x81   :  { %v35_v18 = vsub.f32 %v15_v2, %v33_v17 }
  0x83   :  { %v37_v19 = vmul.f32 %v35_v18, %v35_v18 }
  0x85   :  { %v41_v20 = vsel %vm18_vm0, %v37_v19, 0.0 }
  0x86   :  { %42 = vadd.xlane.f32.xlu1 %v41_v20 }
  0xf1   :  { %v40_v21 = vpop.xlane.xlu1 %39 }
  0xf2   :  { %v44_v22 = vmul.f32 %v40_v21, %v31_v10 }
  0xf4   :  { %v46_v23 = vadd.f32 1e-12, %v44_v22 }
  0xf6   :  { %91 = vrsqrt.f32 %v46_v23  ;;  %vm54_vm3 = vweird.f32 %v46_v23 }
  0xf9   :  { %v43_v24 = vpop.xlane.xlu1 %42 }
  0xfa   :  { %v45_v25 = vmul.f32 %v43_v24, %v31_v10 }
  0xfc   :  { %v92_v26 = vpop.eup %91  ;;  %v47_v27 = vadd.f32 1e-12, %v45_v25 }
  0xfd   :  { %v49_v28 = vmul.f32 %v92_v26, %v46_v23  ;;  %vm55_vm2 = vweird.f32 %v92_v26 }
  0xfe   :  { %93 = vrsqrt.f32 %v47_v27  ;;  %vm56_vm4 = vmor %vm54_vm3, %vm55_vm2  ;;  %vm64_vm6 = vweird.f32 %v47_v27 }
  0xff   :  { %v50_v29 = vmul.f32 %v92_v26, %v49_v28 }
 0x101   :  { %v51_v30 = vmul.f32 0.5, %v50_v29 }
 0x103   :  { %v52_v31 = vsub.f32 1.5, %v51_v30 }
 0x104   :  { %v94_v32 = vpop.eup %93 }
 0x105   :  { %v53_v33 = vmul.f32 %v92_v26, %v52_v31  ;;  %v59_v34 = vmul.f32 %v94_v32, %v47_v27  ;;  %vm65_vm5 = vweird.f32 %v94_v32 }
 0x106   :  { %vm66_vm7 = vmor %vm64_vm6, %vm65_vm5 }
 0x107   :  { %v57_v36 = vsel %vm56_vm4, %v92_v26, %v53_v33  ;;  %v60_v37 = vmul.f32 %v94_v32, %v59_v34 }
 0x108   :  { %v68_v39 = vmul.f32 %v57_v36, %v34_v13 }
 0x109   :  { %v61_v40 = vmul.f32 0.5, %v60_v37 }
 0x10a   :  { %v73_v41 = vmul.f32 %v87_v35, %v68_v39 }
 0x10b   :  { %v62_v42 = vsub.f32 1.5, %v61_v40 }
 0x10c   :  { %v78_v43 = vadd.f32 %v88_v38, %v73_v41 }
 0x10d   :  { %v63_v44 = vmul.f32 %v94_v32, %v62_v42 }
 0x10e   :  { %80 = vst.msk [vmem:[%s143_s3] sm:$0xff] %vm18_vm0, %v78_v43 }
 0x10f   :  { %v67_v45 = vsel %vm66_vm7, %v94_v32, %v63_v44 }
 0x110   :  { %v69_v46 = vmul.f32 %v67_v45, %v35_v18 }
 0x112   :  { %v74_v47 = vmul.f32 %v87_v35, %v69_v46 }
 0x114   :  { %v79_v48 = vadd.f32 %v88_v38, %v74_v47 }
 0x116   :  { %81 = vst.msk [vmem:[%s143_s3 + $0x8] sm:$0xff] %vm18_vm0, %v79_v48 }

// kernel: bert_multilabel_forward.12
= control target key start
LH: loop header
LB: loop body
LE: loop exit
PB: predicated region body
PF: predicated region fallthrough
CT: control target
= control target key end

     0   :  { %vm40_vm0 = vcmask 261120   ;;  %s346_s1 = inlined_call_operand.vmem [shape: f32[32,128], index: 1, kind: input, shape index: {}]   ;;  %s347_s0 = inlined_call_operand.vmem [shape: f32[16,32], index: 0, kind: input, shape index: {}]   ;;  %s348_s2 = inlined_call_operand.vmem [shape: f32[1,128], index: 2, kind: input, shape index: {}]   ;;  %s349_s4 = inlined_call_operand.vmem [shape: f32[1,32], index: 4, kind: input, shape index: {}]   ;;  %s350_s3 = inlined_call_operand.vmem [shape: f32[128,32], index: 3, kind: input, shape index: {}]   ;;  %s351_s5 = inlined_call_operand.vmem [shape: f32[1,32], index: 5, kind: input, shape index: {}]   ;;  %s352_s6 = inlined_call_operand.vmem [shape: f32[1,32], index: 6, kind: input, shape index: {}]   ;;  %s353_s7 = inlined_call_operand.vmem [shape: f32[16,32], index: 7, kind: output, shape index: {}]  }
   0x1   :  { %v32_v0 = vld [vmem:[%s346_s1 + $0x10] sm:$0xff]  ;;  %v33_v1 = vld [vmem:[%s346_s1 + $0x18] sm:$0xff]  ;;  %v30_v2 = vld [vmem:[%s346_s1] sm:$0xff] }
   0x2   :  { %v35_v3 = vpack.c.bf16 %v33_v1, %v32_v0  ;;  %v31_v4 = vld [vmem:[%s346_s1 + $0x8] sm:$0xff]  ;;  %v262_v6 = vld [vmem:[%s347_s0] sm:$0xff]  ;;  %v91_v9 = vld [vmem:[%s350_s3 + $0x70] sm:$0xff] }
   0x3   :  { %v34_v5 = vpack.c.bf16 %v31_v4, %v30_v2  ;;  %v267_v7 = vld [vmem:[%s347_s0 + $0x8] sm:$0xff]  ;;  %v92_v10 = vld [vmem:[%s350_s3 + $0x78] sm:$0xff]  ;;  %v89_v12 = vld [vmem:[%s350_s3 + $0x60] sm:$0xff]  ;;  %v206_v2 = vmov 32.0  }
   0x4   :  { %50 = vmatpush.bf16.msra.mxu0 %v35_v3  ;;  %v29_v8 = vpack.c.bf16 %v267_v7, %v262_v6  ;;  %v100_v11 = vpack.c.bf16 %v92_v10, %v91_v9  ;;  %v90_v13 = vld [vmem:[%s350_s3 + $0x68] sm:$0xff]  ;;  %v87_v15 = vld [vmem:[%s350_s3 + $0x50] sm:$0xff]  ;;  %v88_v16 = vld [vmem:[%s350_s3 + $0x58] sm:$0xff] }
   0x5   :  { %v99_v14 = vpack.c.bf16 %v90_v13, %v89_v12  ;;  %v98_v17 = vpack.c.bf16 %v88_v16, %v87_v15  ;;  %v85_v18 = vld [vmem:[%s350_s3 + $0x40] sm:$0xff]  ;;  %v86_v19 = vld [vmem:[%s350_s3 + $0x48] sm:$0xff]  ;;  %v83_v21 = vld [vmem:[%s350_s3 + $0x30] sm:$0xff] }
   0x6   :  { %105 = vmatpush.bf16.msra.mxu1 %v100_v11  ;;  %v97_v20 = vpack.c.bf16 %v86_v19, %v85_v18  ;;  %v84_v22 = vld [vmem:[%s350_s3 + $0x38] sm:$0xff]  ;;  %v81_v24 = vld [vmem:[%s350_s3 + $0x20] sm:$0xff]  ;;  %v82_v25 = vld [vmem:[%s350_s3 + $0x28] sm:$0xff] }
   0x7   :  { %v96_v23 = vpack.c.bf16 %v84_v22, %v83_v21  ;;  %v95_v26 = vpack.c.bf16 %v82_v25, %v81_v24  ;;  %v79_v27 = vld [vmem:[%s350_s3 + $0x10] sm:$0xff]  ;;  %v80_v28 = vld [vmem:[%s350_s3 + $0x18] sm:$0xff]  ;;  %v77_v30 = vld [vmem:[%s350_s3] sm:$0xff] }
   0x8   :  { %51 = vmatpush.bf16.msra.mxu0 %v34_v5  ;;  %v94_v29 = vpack.c.bf16 %v80_v28, %v79_v27  ;;  %v78_v31 = vld [vmem:[%s350_s3 + $0x8] sm:$0xff]  ;;  %v192_v33 = vld [vmem:[%s348_s2] ss:$0 sm:$0xff] }
   0x9   :  { %v93_v32 = vpack.c.bf16 %v78_v31, %v77_v30  ;;  %v193_v57 = vld [vmem:[%s349_s4] ss:$0 sm:$0xff] }
   0xa   :  { %106 = vmatpush.bf16.msra.mxu1 %v99_v14 }
   0xb   :  { %190 = vmatmul.msk.bf16.vlgmr.msra.gmra.mxu0 %vm40_vm0, %v29_v8 }
   0xe   :  { %107 = vmatpush.bf16.msra.mxu1 %v98_v17 }
  0x12   :  { %108 = vmatpush.bf16.msra.mxu1 %v97_v20 }
  0x16   :  { %109 = vmatpush.bf16.msra.mxu1 %v96_v23 }
  0x1a   :  { %110 = vmatpush.bf16.msra.mxu1 %v95_v26 }
  0x1e   :  { %111 = vmatpush.bf16.msra.mxu1 %v94_v29 }
  0x22   :  { %112 = vmatpush.bf16.msra.mxu1 %v93_v32 }
  0x88   :  { %v53_v34 = vpop.f32.mrf.mxu0 }
  0x89   :  { %v54_v35 = vadd.f32 %v192_v33, %v53_v34 }
  0x8b   :  { %v60_v36 = vmul.f32 0.044715, %v54_v35  ;;  %v58_v51 = vmul.f32 0.5, %v54_v35 }
  0x8d   :  { %v62_v37 = vmul.f32 %v60_v36, %v54_v35  ;;  %v195_v36 = vld [vmem:[%s352_s6] ss:$0 sm:$0xff] }
  0x8f   :  { %v64_v38 = vmul.f32 %v62_v37, %v54_v35 }
  0x90   :  { %v55_v39 = vpop.f32.mrf.mxu0 }
  0x91   :  { %v56_v40 = vadd.f32 %v192_v33, %v55_v39  ;;  %v66_v41 = vadd.f32 %v64_v38, %v54_v35  ;;  %v194_v33 = vld [vmem:[%s351_s5] ss:$0 sm:$0xff] }
  0x93   :  { %v61_v42 = vmul.f32 0.044715, %v56_v40  ;;  %v68_v44 = vmul.f32 0.7978846, %v66_v41  ;;  %v59_v52 = vmul.f32 0.5, %v56_v40 }
  0x95   :  { %v63_v43 = vmul.f32 %v61_v42, %v56_v40  ;;  %196 = vtanh.f32 %v68_v44 }
  0x97   :  { %v65_v45 = vmul.f32 %v63_v43, %v56_v40 }
  0x99   :  { %v67_v46 = vadd.f32 %v65_v45, %v56_v40 }
  0x9b   :  { %v69_v47 = vmul.f32 0.7978846, %v67_v46  ;;  %v197_v48 = vpop.eup %196 }
  0x9c   :  { %v72_v49 = vadd.f32 1.0, %v197_v48 }
  0x9d   :  { %198 = vtanh.f32 %v69_v47 }
  0x9e   :  { %v74_v54 = vmul.f32 %v72_v49, %v58_v51  ;;  %200 = vrcp.f32 %v206_v2 }
  0xa3   :  { %v199_v50 = vpop.eup %198 }
  0xa4   :  { %v73_v53 = vadd.f32 1.0, %v199_v50  ;;  %v201_v3 = vpop.eup %200 }
  0xa5   :  { %v130_v4 = vmul.f32 32.0, %v201_v3  ;;  %vm134_vm1 = vweird.f32 %v201_v3 }
  0xa6   :  { %v75_v55 = vmul.f32 %v73_v53, %v59_v52 }
  0xa7   :  { %v131_v5 = vsub.f32 1.0, %v130_v4 }
  0xa8   :  { %v76_v56 = vpack.c.bf16 %v75_v55, %v74_v54 }
  0xa9   :  { %v132_v8 = vmul.f32 %v201_v3, %v131_v5 }
  0xaa   :  { %113 = vmatmul.bf16.vlgmr.msra.gmra.mxu1 %v76_v56 }
  0xab   :  { %v133_v9 = vadd.f32 %v201_v3, %v132_v8 }
  0xad   :  { %v135_v10 = vsel %vm134_vm1, %v201_v3, %v133_v9 }
 0x127   :  { %v114_v58 = vpop.f32.mrf.mxu1 }
 0x128   :  { %v115_v59 = vadd.f32 %v193_v57, %v114_v58 }
 0x12a   :  { %v119_v60 = vadd.f32 %v115_v59, %v262_v6 }
 0x12c   :  { %v123_v61 = vsel %vm40_vm0, %v119_v60, 0.0 }
 0x12d   :  { %124 = vadd.xlane.f32.xlu0 %v123_v61 }
 0x12f   :  { %v116_v62 = vpop.f32.mrf.mxu1 }
 0x130   :  { %v117_v63 = vadd.f32 %v193_v57, %v116_v62 }
 0x132   :  { %v120_v0 = vadd.f32 %v117_v63, %v267_v7 }
 0x134   :  { %v126_v1 = vsel %vm40_vm0, %v120_v0, 0.0 }
 0x135   :  { %127 = vadd.xlane.f32.xlu0 %v126_v1 }
 0x1a0   :  { %v125_v6 = vpop.xlane.xlu0 %124 }
 0x1a1   :  { %v136_v11 = vmul.f32 %v135_v10, %v125_v6 }
 0x1a3   :  { %v138_v12 = vsub.f32 %v119_v60, %v136_v11 }
 0x1a5   :  { %v140_v13 = vmul.f32 %v138_v12, %v138_v12 }
 0x1a7   :  { %v142_v14 = vsel %vm40_vm0, %v140_v13, 0.0 }
 0x1a8   :  { %143 = vadd.xlane.f32.xlu1 %v142_v14  ;;  %v128_v7 = vpop.xlane.xlu0 %127 }
 0x1a9   :  { %v137_v15 = vmul.f32 %v135_v10, %v128_v7 }
 0x1ab   :  { %v139_v16 = vsub.f32 %v120_v0, %v137_v15 }
 0x1ad   :  { %v141_v17 = vmul.f32 %v139_v16, %v139_v16 }
 0x1af   :  { %v145_v18 = vsel %vm40_vm0, %v141_v17, 0.0 }
 0x1b0   :  { %146 = vadd.xlane.f32.xlu1 %v145_v18 }
 0x21b   :  { %v144_v19 = vpop.xlane.xlu1 %143 }
 0x21c   :  { %v148_v20 = vmul.f32 %v144_v19, %v135_v10 }
 0x21e   :  { %v150_v21 = vadd.f32 1e-12, %v148_v20 }
 0x220   :  { %202 = vrsqrt.f32 %v150_v21  ;;  %vm158_vm3 = vweird.f32 %v150_v21 }
 0x223   :  { %v147_v22 = vpop.xlane.xlu1 %146 }
 0x224   :  { %v149_v23 = vmul.f32 %v147_v22, %v135_v10 }
 0x226   :  { %v203_v24 = vpop.eup %202  ;;  %v151_v25 = vadd.f32 1e-12, %v149_v23 }
 0x227   :  { %v153_v26 = vmul.f32 %v203_v24, %v150_v21  ;;  %vm159_vm2 = vweird.f32 %v203_v24 }
 0x228   :  { %204 = vrsqrt.f32 %v151_v25  ;;  %vm160_vm4 = vmor %vm158_vm3, %vm159_vm2  ;;  %vm168_vm6 = vweird.f32 %v151_v25 }
 0x229   :  { %v154_v27 = vmul.f32 %v203_v24, %v153_v26 }
 0x22b   :  { %v155_v28 = vmul.f32 0.5, %v154_v27 }
 0x22d   :  { %v156_v29 = vsub.f32 1.5, %v155_v28 }
 0x22e   :  { %v205_v30 = vpop.eup %204 }
 0x22f   :  { %v157_v31 = vmul.f32 %v203_v24, %v156_v29  ;;  %v163_v32 = vmul.f32 %v205_v30, %v151_v25  ;;  %vm169_vm5 = vweird.f32 %v205_v30 }
 0x230   :  { %vm170_vm7 = vmor %vm168_vm6, %vm169_vm5 }
 0x231   :  { %v161_v34 = vsel %vm160_vm4, %v203_v24, %v157_v31  ;;  %v164_v35 = vmul.f32 %v205_v30, %v163_v32 }
 0x232   :  { %v172_v37 = vmul.f32 %v161_v34, %v138_v12 }
 0x233   :  { %v165_v38 = vmul.f32 0.5, %v164_v35 }
 0x234   :  { %v177_v39 = vmul.f32 %v194_v33, %v172_v37 }
 0x235   :  { %v166_v40 = vsub.f32 1.5, %v165_v38 }
 0x236   :  { %v182_v41 = vadd.f32 %v195_v36, %v177_v39 }
 0x237   :  { %v167_v42 = vmul.f32 %v205_v30, %v166_v40 }
 0x238   :  { %184 = vst.msk [vmem:[%s353_s7] sm:$0xff] %vm40_vm0, %v182_v41 }
 0x239   :  { %v171_v43 = vsel %vm170_vm7, %v205_v30, %v167_v42 }
 0x23a   :  { %v173_v44 = vmul.f32 %v171_v43, %v139_v16 }
 0x23c   :  { %v178_v45 = vmul.f32 %v194_v33, %v173_v44 }
 0x23e   :  { %v183_v46 = vadd.f32 %v195_v36, %v178_v45 }
 0x240   :  { %185 = vst.msk [vmem:[%s353_s7 + $0x8] sm:$0xff] %vm40_vm0, %v183_v46 }

// kernel: bert_multilabel_forward.11
= control target key start
LH: loop header
LB: loop body
LE: loop exit
PB: predicated region body
PF: predicated region fallthrough
CT: control target
= control target key end

     0   :  { %s1328_s27 = smov 0   ;;  %s1627_s0 = inlined_call_operand.vmem [shape: f32[2,8,32], index: 0, kind: input, shape index: {}]   ;;  %s1628_s1 = inlined_call_operand.vmem [shape: f32[2,1,8], index: 1, kind: input, shape index: {}]   ;;  %s1629_s2 = inlined_call_operand.vmem [shape: f32[12,32,8], index: 2, kind: input, shape index: {}]   ;;  %s1630_s3 = inlined_call_operand.vmem [shape: f32[12,1,8], index: 3, kind: input, shape index: {}]   ;;  %s1631_s4 = inlined_call_operand.vmem [shape: f32[4,8,32], index: 4, kind: input, shape index: {}]   ;;  %s1632_s5 = inlined_call_operand.vmem [shape: f32[1,32], index: 5, kind: input, shape index: {}]   ;;  %s1633_s6 = inlined_call_operand.vmem [shape: f32[1,32], index: 6, kind: input, shape index: {}]   ;;  %s1634_s7 = inlined_call_operand.vmem [shape: f32[1,32], index: 7, kind: input, shape index: {}]   ;;  %s1635_s8 = inlined_call_operand.vmem [shape: f32[2,8,32], index: 8, kind: output, shape index: {}]  }
   0x1 LB: > { %s1197_s28 = sadd.s32 4294967295, %s1280_s27   ;;  %p1201_p0 = scmp.ge.s32.totalorder %s1280_s27, 1  ;;  %s1280_s27 = sphi %s1328_s27, %s18_s27  }
   0x2   : > { %p269_p1 = scmp.lt.s32.totalorder %s1280_s27, 3 }
   0x4   : > { %p270_p2 = pnand %p1201_p0, %p269_p1 }
   0x5   : > { %p304_p3 = scmp.lt.s32.totalorder (!%p270_p2), %s1197_s28, 1 }
   0x6   : > { %273 = sbr.rel (%p270_p2) target bundleno = 1130 (0x46a), region = 52 }
   0xb   : > { %v321_v0 = vld [vmem:[%s1629_s2 + $0x10] sm:$0xff]  ;;  %v322_v1 = vld [vmem:[%s1629_s2 + $0x18] sm:$0xff]  ;;  %v319_v14 = vld [vmem:[%s1629_s2] sm:$0xff]  ;;  %s1637_s28 = smov (!%p304_p3, %s1197_s28), 1  ;;  %vm475_vm0 = vcmask 261120   ;;  %vm775_vm1 = vcmask 64512  }
   0xc   : > { %v325_v2 = vld [vmem:[%s1629_s2 + $0x30] sm:$0xff]  ;;  %v369_v3 = vpack.c.bf16 %v321_v0, %v321_v0  ;;  %v370_v4 = vpack.c.bf16 %v322_v1, %v322_v1  ;;  %v326_v5 = vld [vmem:[%s1629_s2 + $0x38] sm:$0xff]  ;;  %v320_v19 = vld [vmem:[%s1629_s2 + $0x8] sm:$0xff]  ;;  %s1202_s13 = sshll.u32 %s1637_s28, 3  ;;  %v367_v29 = vpack.c.bf16 %v319_v14, %v319_v14  ;;  %vm920_vm2 = vcmask 1043456   ;;  %s310_s18 = scalar_lea.vmem %s1628_s1, %s1637_s28 }
   0xd   : > { %v373_v6 = vpack.c.bf16 %v325_v2, %v325_v2  ;;  %v329_v7 = vld [vmem:[%s1629_s2 + $0x50] sm:$0xff]  ;;  %v330_v8 = vld [vmem:[%s1629_s2 + $0x58] sm:$0xff]  ;;  %v374_v9 = vpack.c.bf16 %v326_v5, %v326_v5  ;;  %v323_v20 = vld [vmem:[%s1629_s2 + $0x20] sm:$0xff]  ;;  %v368_v30 = vpack.c.bf16 %v320_v19, %v320_v19  ;;  %s307_s20 = scalar_lea.vmem %s1627_s0, %s1202_s13  ;;  %s314_s16 = scalar_lea.vmem %s1635_s8, %s1202_s13 }
   0xe   : > { %v377_v10 = vpack.c.bf16 %v329_v7, %v329_v7  ;;  %v378_v11 = vpack.c.bf16 %v330_v8, %v330_v8  ;;  %v333_v12 = vld [vmem:[%s1629_s2 + $0x70] sm:$0xff]  ;;  %v334_v13 = vld [vmem:[%s1629_s2 + $0x78] sm:$0xff]  ;;  %v469_v15 = vunpack.c.l.b16 %v369_v3  ;;  %v470_v16 = vunpack.c.l.b16 %v370_v4  ;;  %v324_v25 = vld [vmem:[%s1629_s2 + $0x28] sm:$0xff] }
   0xf   : > { %v498_v17 = vunpack.c.l.b16 %v373_v6  ;;  %v381_v18 = vpack.c.bf16 %v333_v12, %v333_v12  ;;  %v499_v21 = vunpack.c.l.b16 %v374_v9  ;;  %v382_v24 = vpack.c.bf16 %v334_v13, %v334_v13  ;;  %v327_v26 = vld [vmem:[%s1629_s2 + $0x40] sm:$0xff]  ;;  %v328_v31 = vld [vmem:[%s1629_s2 + $0x48] sm:$0xff]  ;;  %v337_v43 = vld [vmem:[%s1629_s2 + $0x90] sm:$0xff] }
  0x10   : > { %v523_v22 = vunpack.c.l.b16 %v377_v10  ;;  %v524_v23 = vunpack.c.l.b16 %v378_v11  ;;  %v472_v27 = vpack.c.b16 %v470_v16, %v469_v15  ;;  %v331_v32 = vld [vmem:[%s1629_s2 + $0x60] sm:$0xff]  ;;  %v371_v36 = vpack.c.bf16 %v323_v20, %v323_v20  ;;  %v332_v37 = vld [vmem:[%s1629_s2 + $0x68] sm:$0xff]  ;;  %v338_v48 = vld [vmem:[%s1629_s2 + $0x98] sm:$0xff] }
  0x11   : > { %v548_v28 = vunpack.c.l.b16 %v381_v18  ;;  %v501_v33 = vpack.c.b16 %v499_v21, %v498_v17  ;;  %v549_v35 = vunpack.c.l.b16 %v382_v24  ;;  %v467_v38 = vunpack.c.l.b16 %v367_v29  ;;  %v1392_v42 = vld [vmem:[%s307_s20] sm:$0xff]  ;;  %v341_v49 = vld [vmem:[%s1629_s2 + $0xb0] sm:$0xff]  ;;  %v342_v50 = vld [vmem:[%s1629_s2 + $0xb8] sm:$0xff] }
  0x12   : > { %v526_v34 = vpack.c.b16 %v524_v23, %v523_v22  ;;  %485 = vmatpush.bf16.msra.mxu0 %v472_v27  ;;  %v468_v39 = vunpack.c.l.b16 %v368_v30  ;;  %v372_v40 = vpack.c.bf16 %v324_v25, %v324_v25  ;;  %v375_v41 = vpack.c.bf16 %v327_v26, %v327_v26  ;;  %v345_v55 = vld [vmem:[%s1629_s2 + $0xd0] sm:$0xff]  ;;  %v346_v56 = vld [vmem:[%s1629_s2 + $0xd8] sm:$0xff]  ;;  %v335_v63 = vld [vmem:[%s1629_s2 + $0x80] sm:$0xff] }
  0x13   : > { %510 = vmatpush.bf16.msra.mxu1 %v501_v33  ;;  %v551_v44 = vpack.c.b16 %v549_v35, %v548_v28  ;;  %v496_v45 = vunpack.c.l.b16 %v371_v36  ;;  %v376_v46 = vpack.c.bf16 %v328_v31, %v328_v31  ;;  %v379_v47 = vpack.c.bf16 %v331_v32, %v331_v32  ;;  %v349_v57 = vld [vmem:[%s1629_s2 + $0xf0] sm:$0xff]  ;;  %v350_v62 = vld [vmem:[%s1629_s2 + $0xf8] sm:$0xff]  ;;  %v336_v0 = vld [vmem:[%s1629_s2 + $0x88] sm:$0xff] }
  0x14   : > { %535 = vmatpush.bf16.msra.mxu2 %v526_v34  ;;  %v471_v51 = vpack.c.b16 %v468_v39, %v467_v38  ;;  %v497_v52 = vunpack.c.l.b16 %v372_v40  ;;  %v521_v53 = vunpack.c.l.b16 %v375_v41  ;;  %v380_v54 = vpack.c.bf16 %v332_v37, %v332_v37  ;;  %v339_v5 = vld [vmem:[%s1629_s2 + $0xa0] sm:$0xff]  ;;  %v340_v10 = vld [vmem:[%s1629_s2 + $0xa8] sm:$0xff] }
  0x15   : > { %560 = vmatpush.bf16.msra.mxu3 %v551_v44  ;;  %v522_v58 = vunpack.c.l.b16 %v376_v46  ;;  %v546_v59 = vunpack.c.l.b16 %v379_v47  ;;  %v1417_v60 = vpack.c.bf16 %v1392_v42, %v1392_v42  ;;  %v385_v61 = vpack.c.bf16 %v337_v43, %v337_v43  ;;  %v343_v15 = vld [vmem:[%s1629_s2 + $0xc0] sm:$0xff]  ;;  %v344_v16 = vld [vmem:[%s1629_s2 + $0xc8] sm:$0xff] }
  0x16   : > { %486 = vmatpush.bf16.msra.mxu0 %v471_v51  ;;  %v500_v1 = vpack.c.b16 %v497_v52, %v496_v45  ;;  %v547_v2 = vunpack.c.l.b16 %v380_v54  ;;  %v386_v3 = vpack.c.bf16 %v338_v48, %v338_v48  ;;  %v389_v4 = vpack.c.bf16 %v341_v49, %v341_v49  ;;  %v347_v29 = vld [vmem:[%s1629_s2 + $0xe0] sm:$0xff]  ;;  %v348_v30 = vld [vmem:[%s1629_s2 + $0xe8] sm:$0xff]  ;;  %v361_v51 = vld [vmem:[%s1629_s2 + $0x150] sm:$0xff] }
  0x17   : > { %v525_v6 = vpack.c.b16 %v522_v58, %v521_v53  ;;  %v573_v7 = vunpack.c.l.b16 %v385_v61  ;;  %v390_v8 = vpack.c.bf16 %v342_v50, %v342_v50  ;;  %v393_v9 = vpack.c.bf16 %v345_v55, %v345_v55  ;;  %v362_v52 = vld [vmem:[%s1629_s2 + $0x158] sm:$0xff]  ;;  %v353_v55 = vld [vmem:[%s1629_s2 + $0x110] sm:$0xff] }
  0x18   : > { %511 = vmatpush.bf16.msra.mxu1 %v500_v1  ;;  %v550_v11 = vpack.c.b16 %v547_v2, %v546_v59  ;;  %v574_v12 = vunpack.c.l.b16 %v386_v3  ;;  %v598_v13 = vunpack.c.l.b16 %v389_v4  ;;  %v394_v14 = vpack.c.bf16 %v346_v56, %v346_v56  ;;  %v354_v56 = vld [vmem:[%s1629_s2 + $0x118] sm:$0xff]  ;;  %v357_v59 = vld [vmem:[%s1629_s2 + $0x130] sm:$0xff]  ;;  %v359_v2 = vld [vmem:[%s1629_s2 + $0x140] sm:$0xff] }
  0x19   : > { %536 = vmatpush.bf16.msra.mxu2 %v525_v6  ;;  %1204 = vmatmul.msk.bf16.vlgmr.msra.gmra.mxu0 %vm475_vm0, %v1417_v60  ;;  %v599_v17 = vunpack.c.l.b16 %v390_v8  ;;  %v623_v18 = vunpack.c.l.b16 %v393_v9  ;;  %v397_v19 = vpack.c.bf16 %v349_v57, %v349_v57  ;;  %v398_v20 = vpack.c.bf16 %v350_v62, %v350_v62  ;;  %v358_v61 = vld [vmem:[%s1629_s2 + $0x138] sm:$0xff]  ;;  %v360_v3 = vld [vmem:[%s1629_s2 + $0x148] sm:$0xff] }
  0x1a   : > { %561 = vmatpush.bf16.msra.mxu3 %v550_v11  ;;  %v576_v21 = vpack.c.b16 %v574_v12, %v573_v7  ;;  %v624_v22 = vunpack.c.l.b16 %v394_v14  ;;  %v383_v23 = vpack.c.bf16 %v335_v63, %v335_v63  ;;  %v384_v24 = vpack.c.bf16 %v336_v0, %v336_v0  ;;  %v352_v11 = vld [vmem:[%s1629_s2 + $0x108] sm:$0xff]  ;;  %v355_v12 = vld [vmem:[%s1629_s2 + $0x120] sm:$0xff] }
  0x1b   : > { %1205 = vmatmul.msk.bf16.vlgmr.msra.gmra.mxu1 %vm475_vm0, %v1417_v60  ;;  %v601_v25 = vpack.c.b16 %v599_v17, %v598_v13  ;;  %v648_v26 = vunpack.c.l.b16 %v397_v19  ;;  %v649_v27 = vunpack.c.l.b16 %v398_v20  ;;  %v387_v28 = vpack.c.bf16 %v339_v5, %v339_v5  ;;  %v356_v17 = vld [vmem:[%s1629_s2 + $0x128] sm:$0xff] }
  0x1c   : > { %1206 = vmatmul.msk.bf16.vlgmr.msra.gmra.mxu2 %vm475_vm0, %v1417_v60  ;;  %585 = vmatpush.bf16.msrb.mxu0 %v576_v21  ;;  %v626_v31 = vpack.c.b16 %v624_v22, %v623_v18  ;;  %v571_v32 = vunpack.c.l.b16 %v383_v23  ;;  %v572_v33 = vunpack.c.l.b16 %v384_v24  ;;  %v388_v34 = vpack.c.bf16 %v340_v10, %v340_v10  ;;  %v351_v10 = vld [vmem:[%s1629_s2 + $0x100] sm:$0xff]  ;;  %v365_v21 = vld [vmem:[%s1629_s2 + $0x170] sm:$0xff]  ;;  %v366_v22 = vld [vmem:[%s1629_s2 + $0x178] sm:$0xff] }
  0x1d   : > { %1207 = vmatmul.msk.bf16.vlgmr.msra.gmra.mxu3 %vm475_vm0, %v1417_v60  ;;  %610 = vmatpush.bf16.msrb.mxu1 %v601_v25  ;;  %v651_v35 = vpack.c.b16 %v649_v27, %v648_v26  ;;  %v596_v36 = vunpack.c.l.b16 %v387_v28  ;;  %v391_v37 = vpack.c.bf16 %v343_v15, %v343_v15  ;;  %v392_v38 = vpack.c.bf16 %v344_v16, %v344_v16 }
  0x1e   : > { %635 = vmatpush.bf16.msrb.mxu2 %v626_v31  ;;  %v575_v39 = vpack.c.b16 %v572_v33, %v571_v32  ;;  %v597_v40 = vunpack.c.l.b16 %v388_v34  ;;  %v395_v41 = vpack.c.bf16 %v347_v29, %v347_v29  ;;  %v396_v43 = vpack.c.bf16 %v348_v30, %v348_v30 }
  0x1f   : > { %660 = vmatpush.bf16.msrb.mxu3 %v651_v35  ;;  %v621_v44 = vunpack.c.l.b16 %v391_v37  ;;  %v622_v45 = vunpack.c.l.b16 %v392_v38  ;;  %v409_v53 = vpack.c.bf16 %v361_v51, %v361_v51  ;;  %v410_v54 = vpack.c.bf16 %v362_v52, %v362_v52  ;;  %v364_v37 = vld [vmem:[%s1629_s2 + $0x168] sm:$0xff]  ;;  %v1243_v51 = vld [vmem:[%s1630_s3 + $0x4] ss:$0 sm:$0xff]  ;;  %v1244_v52 = vld [vmem:[%s1630_s3 + $0x5] ss:$0 sm:$0xff] }
  0x20   : > { %586 = vmatpush.bf16.msrb.mxu0 %v575_v39  ;;  %v600_v46 = vpack.c.b16 %v597_v40, %v596_v36  ;;  %v646_v47 = vunpack.c.l.b16 %v395_v41  ;;  %v647_v48 = vunpack.c.l.b16 %v396_v43  ;;  %v401_v57 = vpack.c.bf16 %v353_v55, %v353_v55  ;;  %v363_v36 = vld [vmem:[%s1629_s2 + $0x160] sm:$0xff] }
  0x21   : > { %v625_v49 = vpack.c.b16 %v622_v45, %v621_v44  ;;  %v402_v58 = vpack.c.bf16 %v354_v56, %v354_v56  ;;  %v723_v62 = vunpack.c.l.b16 %v409_v53  ;;  %v724_v63 = vunpack.c.l.b16 %v410_v54 }
  0x22   : > { %611 = vmatpush.bf16.msrb.mxu1 %v600_v46  ;;  %v650_v50 = vpack.c.b16 %v647_v48, %v646_v47  ;;  %v405_v0 = vpack.c.bf16 %v357_v59, %v357_v59  ;;  %v406_v1 = vpack.c.bf16 %v358_v61, %v358_v61  ;;  %v673_v4 = vunpack.c.l.b16 %v401_v57  ;;  %v1239_v57 = vld [vmem:[%s1630_s3] ss:$0 sm:$0xff] }
  0x23   : > { %636 = vmatpush.bf16.msrb.mxu2 %v625_v49  ;;  %v674_v5 = vunpack.c.l.b16 %v402_v58  ;;  %v726_v6 = vpack.c.b16 %v724_v63, %v723_v62  ;;  %v407_v7 = vpack.c.bf16 %v359_v2, %v359_v2  ;;  %v408_v13 = vpack.c.bf16 %v360_v3, %v360_v3  ;;  %v1240_v58 = vld [vmem:[%s1630_s3 + $0x1] ss:$0 sm:$0xff] }
  0x24   : > { %661 = vmatpush.bf16.msrb.mxu3 %v650_v50  ;;  %v698_v8 = vunpack.c.l.b16 %v405_v0  ;;  %v699_v9 = vunpack.c.l.b16 %v406_v1  ;;  %v399_v15 = vpack.c.bf16 %v351_v10, %v351_v10  ;;  %v400_v16 = vpack.c.bf16 %v352_v11, %v352_v11  ;;  %v1245_v0 = vld [vmem:[%s1630_s3 + $0x6] ss:$0 sm:$0xff] }
  0x25   : > { %v676_v14 = vpack.c.b16 %v674_v5, %v673_v4  ;;  %v403_v18 = vpack.c.bf16 %v355_v12, %v355_v12  ;;  %v404_v20 = vpack.c.bf16 %v356_v17, %v356_v17  ;;  %v721_v23 = vunpack.c.l.b16 %v407_v7  ;;  %v1246_v4 = vld [vmem:[%s1630_s3 + $0x7] ss:$0 sm:$0xff] }
  0x26   : > { %v701_v19 = vpack.c.b16 %v699_v9, %v698_v8  ;;  %v722_v24 = vunpack.c.l.b16 %v408_v13  ;;  %v671_v25 = vunpack.c.l.b16 %v399_v15  ;;  %v672_v26 = vunpack.c.l.b16 %v400_v16  ;;  %v1241_v13 = vld [vmem:[%s1630_s3 + $0x2] ss:$0 sm:$0xff]  ;;  %v1242_v15 = vld [vmem:[%s1630_s3 + $0x3] ss:$0 sm:$0xff] }
  0x27   : > { %735 = vmatpush.bf16.msra.mxu2 %v726_v6  ;;  %685 = vmatpush.bf16.msra.mxu0 %v676_v14  ;;  %v696_v27 = vunpack.c.l.b16 %v403_v18  ;;  %v413_v28 = vpack.c.bf16 %v365_v21, %v365_v21  ;;  %v697_v29 = vunpack.c.l.b16 %v404_v20  ;;  %v414_v30 = vpack.c.bf16 %v366_v22, %v366_v22 }
  0x28   : > { %710 = vmatpush.bf16.msra.mxu1 %v701_v19  ;;  %v725_v31 = vpack.c.b16 %v722_v24, %v721_v23  ;;  %v675_v32 = vpack.c.b16 %v672_v26, %v671_v25  ;;  %v411_v38 = vpack.c.bf16 %v363_v36, %v363_v36  ;;  %v412_v39 = vpack.c.bf16 %v364_v37, %v364_v37  ;;  %v1247_v25 = vld [vmem:[%s1630_s3 + $0x8] ss:$0 sm:$0xff]  ;;  %v1248_v26 = vld [vmem:[%s1630_s3 + $0x9] ss:$0 sm:$0xff] }
  0x29   : > { %1208 = vmatmul.msk.bf16.vlgmr.msrb.gmra.mxu0 %vm475_vm0, %v1417_v60  ;;  %v748_v33 = vunpack.c.l.b16 %v413_v28  ;;  %v700_v34 = vpack.c.b16 %v697_v29, %v696_v27  ;;  %v749_v35 = vunpack.c.l.b16 %v414_v30 }
  0x2a   : > { %v746_v41 = vunpack.c.l.b16 %v411_v38  ;;  %v747_v43 = vunpack.c.l.b16 %v412_v39 }
  0x2b   : > { %1209 = vmatmul.msk.bf16.vlgmr.msrb.gmra.mxu1 %vm475_vm0, %v1417_v60  ;;  %736 = vmatpush.bf16.msra.mxu2 %v725_v31  ;;  %v751_v40 = vpack.c.b16 %v749_v35, %v748_v33  ;;  %v1249_v31 = vld [vmem:[%s1630_s3 + $0xa] ss:$0 sm:$0xff] }
  0x2c   : > { %1210 = vmatmul.msk.bf16.vlgmr.msrb.gmra.mxu2 %vm475_vm0, %v1417_v60  ;;  %686 = vmatpush.bf16.msra.mxu0 %v675_v32  ;;  %v750_v44 = vpack.c.b16 %v747_v43, %v746_v41  ;;  %v1250_v43 = vld [vmem:[%s1630_s3 + $0xb] ss:$0 sm:$0xff] }
  0x2d   : > { %1211 = vmatmul.msk.bf16.vlgmr.msrb.gmra.mxu3 %vm475_vm0, %v1417_v60  ;;  %711 = vmatpush.bf16.msra.mxu1 %v700_v34 }
  0x2e   : > { %760 = vmatpush.bf16.msra.mxu3 %v751_v40 }
  0x32   : > { %761 = vmatpush.bf16.msra.mxu3 %v750_v44 }
  0x39   : > { %1212 = vmatmul.msk.bf16.vlgmr.msra.gmra.mxu0 %vm475_vm0, %v1417_v60 }
  0x3b   : > { %1213 = vmatmul.msk.bf16.vlgmr.msra.gmra.mxu1 %vm475_vm0, %v1417_v60 }
  0x3c   : > { %1214 = vmatmul.msk.bf16.vlgmr.msra.gmra.mxu2 %vm475_vm0, %v1417_v60 }
  0x3d   : > { %1215 = vmatmul.msk.bf16.vlgmr.msra.gmra.mxu3 %vm475_vm0, %v1417_v60 }
  0x96   : > { %v488_v45 = vpop.f32.mrf.mxu0 }
  0x97   : > { %v489_v1 = vadd.f32 %v1239_v57, %v488_v45 }
  0x98   : > { %v513_v46 = vpop.f32.mrf.mxu1 }
  0x99   : > { %v514_v2 = vadd.f32 %v1240_v58, %v513_v46  ;;  %v767_v10 = vpack.c.bf16 %v489_v1, %v489_v1 }
  0x9b   : > { %v768_v11 = vpack.c.bf16 %v514_v2, %v514_v2 }
  0x9e   : > { %v490_v47 = vpop.f32.mrf.mxu0 }
  0x9f   : > { %v538_v48 = vpop.f32.mrf.mxu2 }
  0xa0   : > { %v563_v49 = vpop.f32.mrf.mxu3  ;;  %v515_v50 = vpop.f32.mrf.mxu1  ;;  %v539_v19 = vadd.f32 %v1241_v13, %v538_v48 }
  0xa1   : > { %v564_v20 = vadd.f32 %v1242_v15, %v563_v49  ;;  %v317_v50 = vld [vmem:[%s310_s18] sm:$0x1] }
  0xa2   : > { %v769_v23 = vpack.c.bf16 %v539_v19, %v539_v19 }
  0xa3   : > { %v770_v24 = vpack.c.bf16 %v564_v20, %v564_v20 }
  0xa6   : > { %v588_v53 = vpop.f32.mrf.mxu0 }
  0xa7   : > { %v540_v54 = vpop.f32.mrf.mxu2  ;;  %v589_v55 = vadd.f32 %v1243_v51, %v588_v53  ;;  %v856_v51 = vsub.f32 1.0, %v317_v50  ;;  %v999_v50 = vld [vmem:[%s1631_s4 + $0x8] sm:$0xff] }
  0xa8   : > { %v565_v56 = vpop.f32.mrf.mxu3  ;;  %v613_v60 = vpop.f32.mrf.mxu1 }
  0xa9   : > { %v771_v59 = vpack.c.bf16 %v589_v55, %v589_v55  ;;  %v614_v61 = vadd.f32 %v1244_v52, %v613_v60  ;;  %v857_v52 = vmul.f32 -10000.0, %v856_v51  ;;  %v1003_v51 = vpack.c.bf16 %v999_v50, %v999_v50 }
  0xab   : > { %v780_v62 = vsel %vm775_vm1, %v771_v59, 0  ;;  %v772_v63 = vpack.c.bf16 %v614_v61, %v614_v61  ;;  %v859_v53 = vperm.slane %v857_v52, 0  ;;  %v1029_v52 = vsel %vm920_vm2, %v1003_v51, 0 }
  0xac   : > { %789 = vmatpush.bf16.xpose.msrb.mxu0 %v780_v62 }
  0xad   : > { %v799_v3 = vsel %vm775_vm1, %v772_v63, 0 }
  0xae   : > { %808 = vmatpush.bf16.xpose.msrb.mxu1 %v799_v3  ;;  %v590_v5 = vpop.f32.mrf.mxu0 }
  0xaf   : > { %v638_v6 = vpop.f32.mrf.mxu2 }
  0xb0   : > { %v639_v7 = vadd.f32 %v1245_v0, %v638_v6  ;;  %v663_v8 = vpop.f32.mrf.mxu3  ;;  %v615_v9 = vpop.f32.mrf.mxu1 }
  0xb1   : > { %v664_v12 = vadd.f32 %v1246_v4, %v663_v8 }
  0xb2   : > { %v773_v14 = vpack.c.bf16 %v639_v7, %v639_v7 }
  0xb3   : > { %v774_v16 = vpack.c.bf16 %v664_v12, %v664_v12  ;;  %1216 = vmatmul.msk.bf16.vlgmr.msrb.gmra.mxu0 %vm775_vm1, %v767_v10 }
  0xb4   : > { %v818_v17 = vsel %vm775_vm1, %v773_v14, 0 }
  0xb5   : > { %v837_v18 = vsel %vm775_vm1, %v774_v16, 0  ;;  %827 = vmatpush.bf16.xpose.msrb.mxu2 %v818_v17  ;;  %1217 = vmatmul.msk.bf16.vlgmr.msrb.gmra.mxu1 %vm775_vm1, %v768_v11 }
  0xb6   : > { %846 = vmatpush.bf16.xpose.msrb.mxu3 %v837_v18  ;;  %v688_v27 = vpop.f32.mrf.mxu0 }
  0xb7   : > { %v640_v21 = vpop.f32.mrf.mxu2  ;;  %v689_v28 = vadd.f32 %v1247_v25, %v688_v27 }
  0xb8   : > { %v665_v22 = vpop.f32.mrf.mxu3  ;;  %v713_v29 = vpop.f32.mrf.mxu1 }
  0xb9   : > { %v714_v30 = vadd.f32 %v1248_v26, %v713_v29  ;;  %v913_v32 = vpack.c.bf16 %v689_v28, %v689_v28 }
  0xbb   : > { %v914_v33 = vpack.c.bf16 %v714_v30, %v714_v30  ;;  %v922_v34 = vsel %vm920_vm2, %v913_v32, 0 }
  0xbc   : > { %1218 = vmatmul.msk.bf16.vlgmr.msrb.gmra.mxu2 %vm775_vm1, %v769_v23  ;;  %931 = vmatpush.bf16.msra.mxu0 %v922_v34 }
  0xbd   : > { %1219 = vmatmul.msk.bf16.vlgmr.msrb.gmra.mxu3 %vm775_vm1, %v770_v24  ;;  %v941_v36 = vsel %vm920_vm2, %v914_v33, 0 }
  0xbe   : > { %950 = vmatpush.bf16.msra.mxu1 %v941_v36  ;;  %v690_v38 = vpop.f32.mrf.mxu0 }
  0xbf   : > { %v738_v35 = vpop.f32.mrf.mxu2 }
  0xc0   : > { %v739_v37 = vadd.f32 %v1249_v31, %v738_v35  ;;  %v715_v40 = vpop.f32.mrf.mxu1  ;;  %v763_v44 = vpop.f32.mrf.mxu3 }
  0xc1   : > { %v764_v46 = vadd.f32 %v1250_v43, %v763_v44 }
  0xc2   : > { %v915_v39 = vpack.c.bf16 %v739_v37, %v739_v37  ;;  %1038 = vmatpush.bf16.msrb.mxu1 %v1029_v52 }
  0xc3   : > { %v916_v47 = vpack.c.bf16 %v764_v46, %v764_v46 }
  0xc4   : > { %v960_v41 = vsel %vm920_vm2, %v915_v39, 0 }
  0xc5   : > { %969 = vmatpush.bf16.msra.mxu2 %v960_v41  ;;  %v979_v48 = vsel %vm920_vm2, %v916_v47, 0  ;;  %v998_v47 = vld [vmem:[%s1631_s4] sm:$0xff] }
  0xc6   : > { %988 = vmatpush.bf16.msra.mxu3 %v979_v48  ;;  %v1002_v48 = vpack.c.bf16 %v998_v47, %v998_v47  ;;  %v1252_v47 = vld [vmem:[%s1633_s6] ss:$0 sm:$0xff] }
  0xc7   : > { %v740_v45 = vpop.f32.mrf.mxu2 }
  0xc8   : > { %v765_v49 = vpop.f32.mrf.mxu3 }
  0xc9   : > { %v1010_v49 = vsel %vm920_vm2, %v1002_v48, 0 }
  0xca   : > { %1019 = vmatpush.bf16.msrb.mxu0 %v1010_v49  ;;  %v1253_v49 = vld [vmem:[%s1634_s7] ss:$0 sm:$0xff] }
 0x130   : > { %v791_v54 = vpop.f32.mrf.mxu0 }
 0x131   : > { %v852_v55 = vmul.f32 0.35355338, %v791_v54 }
 0x132   : > { %v810_v56 = vpop.f32.mrf.mxu1 }
 0x133   : > { %v861_v60 = vadd.f32 %v859_v53, %v852_v55  ;;  %v853_v57 = vmul.f32 0.35355338, %v810_v56  ;;  %v1001_v56 = vld [vmem:[%s1631_s4 + $0x18] sm:$0xff] }
 0x135   : > { %v865_v58 = vsel %vm775_vm1, %v861_v60, -inf  ;;  %v862_v61 = vadd.f32 %v859_v53, %v853_v57 }
 0x136   : > { %866 = vmax.xlane.f32.xlu1 %v865_v58 }
 0x137   : > { %v868_v63 = vsel %vm775_vm1, %v862_v61, -inf }
 0x138   : > { %v793_v59 = vpop.f32.mrf.mxu0 }
 0x13a   : > { %v812_v62 = vpop.f32.mrf.mxu1 }
 0x13e   : > { %869 = vmax.xlane.f32.xlu1 %v868_v63 }
 0x13f   : > { %v829_v0 = vpop.f32.mrf.mxu2 }
 0x140   : > { %v854_v1 = vmul.f32 0.35355338, %v829_v0  ;;  %v848_v2 = vpop.f32.mrf.mxu3 }
 0x141   : > { %v855_v4 = vmul.f32 0.35355338, %v848_v2 }
 0x142   : > { %v863_v3 = vadd.f32 %v859_v53, %v854_v1 }
 0x143   : > { %v864_v8 = vadd.f32 %v859_v53, %v855_v4  ;;  %v1000_v53 = vld [vmem:[%s1631_s4 + $0x10] sm:$0xff] }
 0x144   : > { %v871_v5 = vsel %vm775_vm1, %v863_v3, -inf  ;;  %v1004_v54 = vpack.c.bf16 %v1000_v53, %v1000_v53 }
 0x145   : > { %872 = vmax.xlane.f32.xlu0 %v871_v5  ;;  %v874_v9 = vsel %vm775_vm1, %v864_v8, -inf }
 0x146   : > { %v1048_v55 = vsel %vm920_vm2, %v1004_v54, 0 }
 0x147   : > { %v831_v6 = vpop.f32.mrf.mxu2  ;;  %1057 = vmatpush.bf16.msrb.mxu2 %v1048_v55 }
 0x148   : > { %v850_v7 = vpop.f32.mrf.mxu3 }
 0x14d   : > { %875 = vmax.xlane.f32.xlu0 %v874_v9 }
 0x1a9   : > { %v867_v10 = vpop.xlane.xlu1 %866 }
 0x1aa   : > { %v877_v11 = vsub.f32 %v861_v60, %v867_v10  ;;  %v1005_v60 = vpack.c.bf16 %v1001_v56, %v1001_v56 }
 0x1ac   : > { %v881_v12 = vmul.f32 1.442695, %v877_v11  ;;  %v1067_v57 = vsel %vm920_vm2, %v1005_v60, 0 }
 0x1ad   : > { %1076 = vmatpush.bf16.msrb.mxu3 %v1067_v57 }
 0x1ae   : > { %1254 = vpow2.f32 %v881_v12 }
 0x1b1   : > { %v870_v13 = vpop.xlane.xlu1 %869 }
 0x1b2   : > { %v878_v14 = vsub.f32 %v862_v61, %v870_v13 }
 0x1b4   : > { %v1255_v15 = vpop.eup %1254  ;;  %v883_v16 = vmul.f32 1.442695, %v878_v14 }
 0x1b5   : > { %v889_v17 = vsel %vm775_vm1, %v1255_v15, 0.0 }
 0x1b6   : > { %1256 = vpow2.f32 %v883_v16  ;;  %890 = vadd.xlane.f32.xlu0 %v889_v17 }
 0x1b8   : > { %v873_v18 = vpop.xlane.xlu0 %872 }
 0x1b9   : > { %v879_v19 = vsub.f32 %v863_v3, %v873_v18 }
 0x1bb   : > { %v885_v20 = vmul.f32 1.442695, %v879_v19  ;;  %v1251_v19 = vld [vmem:[%s1632_s5] ss:$0 sm:$0xff] }
 0x1bc   : > { %v1257_v21 = vpop.eup %1256 }
 0x1bd   : > { %1258 = vpow2.f32 %v885_v20  ;;  %v892_v22 = vsel %vm775_vm1, %v1257_v21, 0.0 }
 0x1be   : > { %893 = vadd.xlane.f32.xlu1 %v892_v22 }
 0x1c0   : > { %v876_v23 = vpop.xlane.xlu0 %875 }
 0x1c1   : > { %v880_v24 = vsub.f32 %v864_v8, %v876_v23 }
 0x1c3   : > { %v1259_v25 = vpop.eup %1258  ;;  %v887_v26 = vmul.f32 1.442695, %v880_v24 }
 0x1c4   : > { %v895_v27 = vsel %vm775_vm1, %v1259_v25, 0.0 }
 0x1c5   : > { %1260 = vpow2.f32 %v887_v26  ;;  %896 = vadd.xlane.f32.xlu2 %v895_v27  ;;  %v1282_v26 = vmov 32.0  }
 0x1cb   : > { %v1261_v28 = vpop.eup %1260 }
 0x1cc   : > { %v898_v29 = vsel %vm775_vm1, %v1261_v28, 0.0 }
 0x1cd   : > { %899 = vadd.xlane.f32.xlu2 %v898_v29 }
 0x229   : > { %v891_v30 = vpop.xlane.xlu0 %890 }
 0x22a   : > { %1262 = vrcp.f32 %v891_v30 }
 0x230   : > { %v1263_v31 = vpop.eup %1262 }
 0x231   : > { %v905_v32 = vmul.f32 %v1263_v31, %v1255_v15  ;;  %v894_v33 = vpop.xlane.xlu1 %893 }
 0x232   : > { %1264 = vrcp.f32 %v894_v33 }
 0x233   : > { %v909_v34 = vpack.c.bf16 %v905_v32, %v905_v32 }
 0x235   : > { %1220 = vmatmul.msk.bf16.vlgmr.msra.gmra.mxu0 %vm775_vm1, %v909_v34 }
 0x238   : > { %v1265_v35 = vpop.eup %1264  ;;  %v897_v36 = vpop.xlane.xlu2 %896 }
 0x239   : > { %v906_v37 = vmul.f32 %v1265_v35, %v1257_v21  ;;  %1266 = vrcp.f32 %v897_v36 }
 0x23b   : > { %v910_v38 = vpack.c.bf16 %v906_v37, %v906_v37 }
 0x23d   : > { %1221 = vmatmul.msk.bf16.vlgmr.msra.gmra.mxu1 %vm775_vm1, %v910_v38 }
 0x23f   : > { %v1267_v39 = vpop.eup %1266 }
 0x240   : > { %v907_v40 = vmul.f32 %v1267_v39, %v1259_v25  ;;  %v900_v41 = vpop.xlane.xlu2 %899 }
 0x241   : > { %1268 = vrcp.f32 %v900_v41 }
 0x242   : > { %v911_v43 = vpack.c.bf16 %v907_v40, %v907_v40  ;;  %1270 = vrcp.f32 %v1282_v26 }
 0x244   : > { %1222 = vmatmul.msk.bf16.vlgmr.msra.gmra.mxu2 %vm775_vm1, %v911_v43 }
 0x247   : > { %v1269_v44 = vpop.eup %1268 }
 0x248   : > { %v908_v45 = vmul.f32 %v1269_v44, %v1261_v28  ;;  %v1271_v27 = vpop.eup %1270 }
 0x249   : > { %v1101_v28 = vmul.f32 32.0, %v1271_v27  ;;  %vm1105_vm3 = vweird.f32 %v1271_v27 }
 0x24a   : > { %v912_v46 = vpack.c.bf16 %v908_v45, %v908_v45 }
 0x24b   : > { %v1102_v29 = vsub.f32 1.0, %v1101_v28 }
 0x24c   : > { %1223 = vmatmul.msk.bf16.vlgmr.msra.gmra.mxu3 %vm775_vm1, %v912_v46 }
 0x24d   : > { %v1103_v30 = vmul.f32 %v1271_v27, %v1102_v29 }
 0x24f   : > { %v1104_v31 = vadd.f32 %v1271_v27, %v1103_v30 }
 0x251   : > { %v1106_v32 = vsel %vm1105_vm3, %v1271_v27, %v1104_v31 }
 0x2b2   : > { %v933_v58 = vpop.f32.mrf.mxu0 }
 0x2b3   : > { %v994_v59 = vpack.c.bf16 %v933_v58, %v933_v58 }
 0x2b5   : > { %1224 = vmatmul.msk.bf16.vlgmr.msrb.gmra.mxu0 %vm775_vm1, %v994_v59 }
 0x2ba   : > { %v935_v61 = vpop.f32.mrf.mxu0  ;;  %v952_v62 = vpop.f32.mrf.mxu1 }
 0x2bb   : > { %v995_v63 = vpack.c.bf16 %v952_v62, %v952_v62 }
 0x2bd   : > { %1225 = vmatmul.msk.bf16.vlgmr.msrb.gmra.mxu1 %vm775_vm1, %v995_v63 }
 0x2c2   : > { %v954_v0 = vpop.f32.mrf.mxu1 }
 0x2c7   : > { %v971_v1 = vpop.f32.mrf.mxu2 }
 0x2c8   : > { %v996_v2 = vpack.c.bf16 %v971_v1, %v971_v1 }
 0x2ca   : > { %1226 = vmatmul.msk.bf16.vlgmr.msrb.gmra.mxu2 %vm775_vm1, %v996_v2 }
 0x2cf   : > { %v973_v3 = vpop.f32.mrf.mxu2  ;;  %v990_v4 = vpop.f32.mrf.mxu3 }
 0x2d0   : > { %v997_v5 = vpack.c.bf16 %v990_v4, %v990_v4 }
 0x2d2   : > { %1227 = vmatmul.msk.bf16.vlgmr.msrb.gmra.mxu3 %vm775_vm1, %v997_v5 }
 0x2d7   : > { %v992_v6 = vpop.f32.mrf.mxu3 }
 0x332   : > { %v1021_v7 = vpop.f32.mrf.mxu0 }
 0x333   : > { %v1082_v13 = vsel %vm475_vm0, %v1021_v7, 0.0 }
 0x33a   : > { %v1023_v8 = vpop.f32.mrf.mxu0  ;;  %v1040_v9 = vpop.f32.mrf.mxu1 }
 0x33b   : > { %v1083_v12 = vsel %vm475_vm0, %v1040_v9, 0.0 }
 0x33c   : > { %v1084_v15 = vadd.f32 %v1083_v12, %v1082_v13 }
 0x342   : > { %v1042_v10 = vpop.f32.mrf.mxu1 }
 0x34d   : > { %v1059_v11 = vpop.f32.mrf.mxu2 }
 0x34e   : > { %v1085_v14 = vsel %vm475_vm0, %v1059_v11, 0.0 }
 0x34f   : > { %v1086_v16 = vadd.f32 %v1085_v14, %v1084_v15 }
 0x355   : > { %v1061_v17 = vpop.f32.mrf.mxu2  ;;  %v1078_v18 = vpop.f32.mrf.mxu3 }
 0x356   : > { %v1087_v20 = vsel %vm475_vm0, %v1078_v18, 0.0 }
 0x357   : > { %v1088_v21 = vadd.f32 %v1087_v20, %v1086_v16 }
 0x359   : > { %v1093_v22 = vadd.f32 %v1251_v19, %v1088_v21 }
 0x35b   : > { %v1094_v23 = vadd.f32 %v1093_v22, %v1392_v42 }
 0x35d   : > { %v1080_v24 = vpop.f32.mrf.mxu3  ;;  %v1097_v25 = vsel %vm475_vm0, %v1094_v23, 0.0 }
 0x35e   : > { %1098 = vadd.xlane.f32.xlu2 %v1097_v25 }
 0x3d1   : > { %v1099_v33 = vpop.xlane.xlu2 %1098 }
 0x3d2   : > { %v1107_v34 = vmul.f32 %v1106_v32, %v1099_v33 }
 0x3d4   : > { %v1108_v35 = vsub.f32 %v1094_v23, %v1107_v34 }
 0x3d6   : > { %v1109_v36 = vmul.f32 %v1108_v35, %v1108_v35 }
 0x3d8   : > { %v1110_v37 = vsel %vm475_vm0, %v1109_v36, 0.0 }
 0x3d9   : > { %1111 = vadd.xlane.f32.xlu0 %v1110_v37 }
 0x44c   : > { %v1112_v42 = vpop.xlane.xlu0 %1111 }
 0x44d   : > { %v1113_v38 = vmul.f32 %v1112_v42, %v1106_v32 }
 0x44f   : > { %v1114_v39 = vadd.f32 1e-12, %v1113_v38 }
 0x451   : > { %1272 = vrsqrt.f32 %v1114_v39  ;;  %vm1121_vm5 = vweird.f32 %v1114_v39 }
 0x457   : > { %v1273_v40 = vpop.eup %1272 }
 0x458   : > { %v1116_v41 = vmul.f32 %v1273_v40, %v1114_v39  ;;  %vm1122_vm4 = vweird.f32 %v1273_v40 }
 0x459   : > { %vm1123_vm6 = vmor %vm1121_vm5, %vm1122_vm4 }
 0x45a   : > { %v1117_v43 = vmul.f32 %v1273_v40, %v1116_v41 }
 0x45c   : > { %v1118_v44 = vmul.f32 0.5, %v1117_v43 }
 0x45e   : > { %v1119_v45 = vsub.f32 1.5, %v1118_v44 }
 0x460   : > { %v1120_v46 = vmul.f32 %v1273_v40, %v1119_v45 }
 0x462   : > { %v1124_v48 = vsel %vm1123_vm6, %v1273_v40, %v1120_v46 }
 0x463   : > { %v1125_v50 = vmul.f32 %v1124_v48, %v1108_v35 }
 0x465   : > { %v1129_v51 = vmul.f32 %v1252_v47, %v1125_v50 }
 0x467   : > { %v1133_v52 = vadd.f32 %v1253_v49, %v1129_v51 }
 0x469   : > { %1134 = vst.msk [vmem:[%s314_s16] sm:$0xff] %vm475_vm0, %v1133_v52 }
 0x46a PF: > { %s18_s27 = sadd.s32 1, %s1280_s27  }
 0x46b   : > { %p15_p4 = scmp.ge.s32.totalorder %s18_s27, 4  }
 0x46d   :  { %17 = sbr.rel (!%p15_p4) target bundleno = 1 (0x1), region = 85 }

</bundles_post_ra>
